<compile_context>
chip_gen: v7x
topology: tpu7x:2x2x1
jax: 0.10.0
libtpu: 0.0.40
codegen_flags: <defaults>
</compile_context>

<pallas_src>
import functools

import jax
import jax.numpy as jnp
from jax.experimental import pallas as pl
from jax.experimental.pallas import tpu as pltpu


def _round_up(n, m):
    return ((n + m - 1) // m) * m


# ---------------------------------------------------------------------------
# in-kernel helpers
# ---------------------------------------------------------------------------
def _layer_norm_pad(x, gamma, beta, c_real, eps=1e-5):
    """LayerNorm over the real (unpadded) channel count.

    x: (rows, C_pad) f32 with padded columns exactly zero.
    gamma/beta: (1, C_pad) f32 with padded columns zero, so padded output stays zero.
    """
    inv_c = 1.0 / c_real
    mean = jnp.sum(x, axis=-1, keepdims=True) * inv_c
    var = jnp.sum(x * x, axis=-1, keepdims=True) * inv_c - mean * mean
    return (x - mean) * jax.lax.rsqrt(var + eps) * gamma + beta


# ---------------------------------------------------------------------------
# Fused forward kernel: grid = (batch_chunks, n_layer)
#   layer axis is "arbitrary": residual stream stays resident in VMEM scratch.
# ---------------------------------------------------------------------------
def gpt_fused_kernel(x0_ref, mask_ref,
                     ln1g_ref, ln1b_ref, wqkv_ref, wproj_ref, bproj_ref,
                     ln2g_ref, ln2b_ref, w1_ref, b1_ref, w2_ref, b2_ref,
                     lnfg_ref, lnfb_ref, wlm_ref, blm_ref,
                     out_ref, x_vmem,
                     *, b_chunk, seq_len, n_head, head_size, c_real, c_pad):
    layer = pl.program_id(1)

    @pl.when(layer == 0)
    def _init():
        # Load this chunk's embeddings into the resident residual stream (f32).
        x_vmem[...] = x0_ref[...].astype(jnp.float32)

    x = x_vmem[...]                                         # (rows, C_pad) f32

    # ---- multi-head causal self-attention over LN1(x) ----
    xn = _layer_norm_pad(x, ln1g_ref[0], ln1b_ref[0], c_real)
    # Fused Q|K|V projection: one lane-dense bf16 MXU matmul over all B*T rows.
    qkv = jnp.dot(xn.astype(jnp.bfloat16), wqkv_ref[0],
                  preferred_element_type=jnp.float32)       # (rows, 3*C_pad)
    scale = head_size ** (-0.5)                             # == k.shape[-1] ** -0.5
    q_all = (qkv[:, 0:c_real] * scale).astype(jnp.bfloat16)   # scale folded into q
    k_all = qkv[:, c_pad:c_pad + c_real].astype(jnp.bfloat16)
    v_all = qkv[:, 2 * c_pad:2 * c_pad + c_real].astype(jnp.bfloat16)

    mask = mask_ref[...]                                    # (T, T) additive causal bias

    # TODO(synk): replace the static (batch, head) loop with a head-batched dot_general
    # once n_head/head_size grow; at head_size=8, T<=16 each pass is negligible.
    batch_rows = []
    for b in range(b_chunk):                                # static unrolled
        r0 = b * seq_len
        head_outs = []
        for h in range(n_head):                             # static unrolled
            c0 = h * head_size
            qh = q_all[r0:r0 + seq_len, c0:c0 + head_size]
            kh = k_all[r0:r0 + seq_len, c0:c0 + head_size]
            vh = v_all[r0:r0 + seq_len, c0:c0 + head_size]
            # q @ k^T without an explicit transpose (contract the head dim).
            s = jax.lax.dot_general(qh, kh, (((1,), (1,)), ((), ())),
                                    preferred_element_type=jnp.float32)  # (T, T)
            s = s + mask                                    # additive causal bias
            s = s - jnp.max(s, axis=-1, keepdims=True)      # stable softmax (f32)
            p = jnp.exp(s)
            p = p * pl.reciprocal(jnp.sum(p, axis=-1, keepdims=True), approx=True)
            # TODO(synk): attention-weight dropout is identity in eval mode.
            head_outs.append(jnp.dot(p.astype(jnp.bfloat16), vh,
                                     preferred_element_type=jnp.float32))  # (T, hs)
        # Assemble this batch element's heads in vregs (no VMEM scratch roundtrip).
        batch_rows.append(jnp.concatenate(head_outs, axis=-1))             # (T, C_real)
    attn = batch_rows[0] if b_chunk == 1 else jnp.concatenate(batch_rows, axis=0)

    proj = jnp.dot(attn.astype(jnp.bfloat16), wproj_ref[0],
                   preferred_element_type=jnp.float32) + bproj_ref[0]
    x = x + proj                                            # residual 1

    # ---- feed forward over LN2(x) ----
    xn2 = _layer_norm_pad(x, ln2g_ref[0], ln2b_ref[0], c_real)
    h1 = jnp.dot(xn2.astype(jnp.bfloat16), w1_ref[0],
                 preferred_element_type=jnp.float32) + b1_ref[0]
    h1 = jnp.maximum(h1, 0.0)                               # ReLU (f32 VPU)
    ffn = jnp.dot(h1.astype(jnp.bfloat16), w2_ref[0],
                  preferred_element_type=jnp.float32) + b2_ref[0]
    x = x + ffn                                             # residual 2
    x_vmem[...] = x                                         # stays resident in VMEM

    # ---- final LayerNorm + LM head, computed once on the last layer step ----
    @pl.when(layer == pl.num_programs(1) - 1)
    def _final():
        xf = _layer_norm_pad(x, lnfg_ref[...], lnfb_ref[...], c_real)
        logits = jnp.dot(xf.astype(jnp.bfloat16), wlm_ref[...],
                         preferred_element_type=jnp.float32) + blm_ref[...]
        out_ref[...] = logits.astype(out_ref.dtype)
        # TODO(synk): tile the vocab axis (tv >= 512) if vocab grows large enough that
        # the (C_pad, V_pad) LM head tile no longer fits comfortably in VMEM.


# ---------------------------------------------------------------------------
# pallas_call wrapper
# ---------------------------------------------------------------------------
def run_gpt(x0, mask_bias, params, *, batch, seq_len, n_head, head_size,
            c_real, n_layer, batch_chunks=1):
    rows, c_pad = x0.shape
    v_pad = params['w_lm'].shape[1]
    h1_pad = params['w1'].shape[-1]
    assert batch % batch_chunks == 0 and rows == batch * seq_len
    b_chunk = batch // batch_chunks
    rows_c = b_chunk * seq_len

    def inv2(shape):                     # grid-invariant 2-D block (fetched once)
        return pl.BlockSpec(shape, lambda c, l: (0, 0))

    def per_layer(shape):                # stacked (n_layer, ...) weights, blocked on l
        return pl.BlockSpec((1,) + shape, lambda c, l: (l, 0, 0))

    kernel = functools.partial(gpt_fused_kernel, b_chunk=b_chunk, seq_len=seq_len,
                               n_head=n_head, head_size=head_size,
                               c_real=c_real, c_pad=c_pad)

    in_specs = [
        pl.BlockSpec((rows_c, c_pad), lambda c, l: (c, 0)),   # x0 (per batch chunk)
        inv2((seq_len, seq_len)),                             # additive causal bias
        per_layer((1, c_pad)), per_layer((1, c_pad)),         # ln1 gamma, beta
        per_layer((c_pad, 3 * c_pad)),                        # fused W_qkv (bf16)
        per_layer((c_real, c_pad)), per_layer((1, c_pad)),    # W_proj (bf16), b_proj
        per_layer((1, c_pad)), per_layer((1, c_pad)),         # ln2 gamma, beta
        per_layer((c_pad, h1_pad)), per_layer((1, h1_pad)),   # W1 (bf16), b1
        per_layer((h1_pad, c_pad)), per_layer((1, c_pad)),    # W2 (bf16), b2
        inv2((1, c_pad)), inv2((1, c_pad)),                   # final LN gamma, beta
        inv2((c_pad, v_pad)), inv2((1, v_pad)),               # LM head W (bf16), b
    ]
    return pl.pallas_call(
        kernel,
        out_shape=jax.ShapeDtypeStruct((rows, v_pad), jnp.float32),
        grid=(batch_chunks, n_layer),
        in_specs=in_specs,
        out_specs=pl.BlockSpec((rows_c, v_pad), lambda c, l: (c, 0)),
        scratch_shapes=[pltpu.VMEM((rows_c, c_pad), jnp.float32)],   # residual stream
        compiler_params=pltpu.CompilerParams(
            dimension_semantics=("parallel", "arbitrary")),
    )(x0, mask_bias,
      params['ln1_g'], params['ln1_b'], params['wqkv'],
      params['wproj'], params['bproj'],
      params['ln2_g'], params['ln2_b'],
      params['w1'], params['b1'], params['w2'], params['b2'],
      params['lnf_g'], params['lnf_b'], params['w_lm'], params['b_lm'])


def gpt_forward(idx, params, config, *, batch_chunks=1):
    """Equivalent of GPTLanguageModel.forward(idx, targets=None) -> logits."""
    B, T = idx.shape
    block_size = config['block_size']
    if T > block_size:
        idx = idx[:, -block_size:]
        T = block_size
    c_pad = params['tok_emb'].shape[1]
    # Embedding gathers (glue, not the kernel hot path); tables are lane-padded so the
    # kernel input is already lane-dense with zero pad columns.
    tok = jnp.take(params['tok_emb'], idx, axis=0)           # (B, T, C_pad)
    pos = params['pos_emb'][:T]                              # (T, C_pad)
    x0 = (tok + pos[None, :, :]).reshape(B * T, c_pad)
    # Additive causal bias (0 on/below diagonal, large-finite negative above).
    row = jnp.arange(T)[:, None]
    col = jnp.arange(T)[None, :]
    mask_bias = jnp.where(col <= row, 0.0, -1e30).astype(jnp.float32)

    logits_pad = run_gpt(x0, mask_bias, params,
                         batch=B, seq_len=T, n_head=config['n_head'],
                         head_size=config['head_size'], c_real=config['n_embed'],
                         n_layer=config['n_layer'], batch_chunks=batch_chunks)
    # Padded vocab columns are exactly zero (zero-padded W/b); drop them here.
    logits = logits_pad.reshape(B, T, -1)[:, :, :config['vocab_size']]
    # TODO(synk): cross-entropy loss branch (targets is not None) not implemented.
    return logits


# ---------------------------------------------------------------------------
# Deterministic parameter construction (std=0.02 normals, zero biases),
# lane-padded and stacked over layers for the fused kernel.
# ---------------------------------------------------------------------------
def make_params(key, config):
    V, Bs, C = config['vocab_size'], config['block_size'], config['n_embed']
    L = config['n_layer']
    c_pad = _round_up(C, 128)
    h1 = 4 * C
    h1_pad = _round_up(h1, 128)
    v_pad = _round_up(V, 128)

    def normal(k, shape):
        return jax.random.normal(k, shape, jnp.float32) * 0.02

    def pad_to(a, shape):
        out = jnp.zeros(shape, a.dtype)
        return out.at[tuple(slice(0, s) for s in a.shape)].set(a)

    keys = iter(jax.random.split(key, 3 + 6 * L))

    tok_emb = pad_to(normal(next(keys), (V, C)), (V, c_pad))
    pos_emb = pad_to(normal(next(keys), (Bs, C)), (Bs, c_pad))

    def ln_gamma():
        return pad_to(jnp.ones((L, 1, C), jnp.float32), (L, 1, c_pad))

    wqkv = jnp.zeros((L, c_pad, 3 * c_pad), jnp.float32)
    wproj = jnp.zeros((L, C, c_pad), jnp.float32)
    w1 = jnp.zeros((L, c_pad, h1_pad), jnp.float32)
    w2 = jnp.zeros((L, h1_pad, c_pad), jnp.float32)
    for l in range(L):
        wq = normal(next(keys), (C, C))
        wk = normal(next(keys), (C, C))
        wv = normal(next(keys), (C, C))
        # q / k / v each get their own 128-lane slot (lane-offset-0 slices in-kernel).
        wqkv = wqkv.at[l, :C, 0:C].set(wq)
        wqkv = wqkv.at[l, :C, c_pad:c_pad + C].set(wk)
        wqkv = wqkv.at[l, :C, 2 * c_pad:2 * c_pad + C].set(wv)
        wproj = wproj.at[l, :, :C].set(normal(next(keys), (C, C)))
        w1 = w1.at[l, :C, :h1].set(normal(next(keys), (C, h1)))
        w2 = w2.at[l, :h1, :C].set(normal(next(keys), (h1, C)))
    w_lm = pad_to(normal(next(keys), (C, V)), (c_pad, v_pad))

    return {
        'tok_emb': tok_emb,
        'pos_emb': pos_emb,
        'ln1_g': ln_gamma(), 'ln1_b': jnp.zeros((L, 1, c_pad), jnp.float32),
        'wqkv': wqkv.astype(jnp.bfloat16),
        'wproj': wproj.astype(jnp.bfloat16),
        'bproj': jnp.zeros((L, 1, c_pad), jnp.float32),
        'ln2_g': ln_gamma(), 'ln2_b': jnp.zeros((L, 1, c_pad), jnp.float32),
        'w1': w1.astype(jnp.bfloat16), 'b1': jnp.zeros((L, 1, h1_pad), jnp.float32),
        'w2': w2.astype(jnp.bfloat16), 'b2': jnp.zeros((L, 1, c_pad), jnp.float32),
        'lnf_g': pad_to(jnp.ones((1, C), jnp.float32), (1, c_pad)),
        'lnf_b': jnp.zeros((1, c_pad), jnp.float32),
        'w_lm': w_lm.astype(jnp.bfloat16),
        'b_lm': jnp.zeros((1, v_pad), jnp.float32),
    }


if __name__ == "__main__":
    config = {
        'vocab_size': 65,
        'block_size': 16,
        'n_embed': 32,
        'n_head': 4,
        'n_layer': 2,
        'dropout_rate': 0.0,   # dropout is identity at inference
    }
    config['head_size'] = config['n_embed'] // config['n_head']

    key = jax.random.PRNGKey(0)
    pkey, ikey = jax.random.split(key)
    params = make_params(pkey, config)

    batch, time = 2, 8
    idx = jax.random.randint(ikey, (batch, time), 0, config['vocab_size'],
                             dtype=jnp.int32)

    # batch_chunks=1 keeps all B*T rows in one MXU pass; set batch_chunks=2 on v7x
    # (when B is even) to keep both TensorCores busy.
    logits = gpt_forward(idx, params, config, batch_chunks=1)
    jax.block_until_ready(logits)
    assert logits.shape == (batch, time, config['vocab_size'])
    assert bool(jnp.isfinite(logits).all())
    print("KERNEL_OK")
</pallas_src>

<mosaic_0001>
module attributes {stable_mosaic.version = 11 : i64} {
  func.func @gpt_fused_kernel(%arg0: i32, %arg1: i32, %arg2: memref<16x128xf32, #tpu.memory_space<vmem>>, %arg3: memref<8x8xf32, #tpu.memory_space<vmem>>, %arg4: memref<1x1x128xf32, #tpu.memory_space<vmem>>, %arg5: memref<1x1x128xf32, #tpu.memory_space<vmem>>, %arg6: memref<1x128x384xbf16, #tpu.memory_space<vmem>>, %arg7: memref<1x32x128xbf16, #tpu.memory_space<vmem>>, %arg8: memref<1x1x128xf32, #tpu.memory_space<vmem>>, %arg9: memref<1x1x128xf32, #tpu.memory_space<vmem>>, %arg10: memref<1x1x128xf32, #tpu.memory_space<vmem>>, %arg11: memref<1x128x128xbf16, #tpu.memory_space<vmem>>, %arg12: memref<1x1x128xf32, #tpu.memory_space<vmem>>, %arg13: memref<1x128x128xbf16, #tpu.memory_space<vmem>>, %arg14: memref<1x1x128xf32, #tpu.memory_space<vmem>>, %arg15: memref<1x128xf32, #tpu.memory_space<vmem>>, %arg16: memref<1x128xf32, #tpu.memory_space<vmem>>, %arg17: memref<128x128xbf16, #tpu.memory_space<vmem>>, %arg18: memref<1x128xf32, #tpu.memory_space<vmem>>, %arg19: memref<16x128xf32, #tpu.memory_space<vmem>>, %arg20: memref<16x128xf32, #tpu.memory_space<vmem>>) attributes {dimension_semantics = [#tpu.dimension_semantics<parallel>, #tpu.dimension_semantics<arbitrary>], iteration_bounds = array<i64: 1, 2>, scalar_prefetch = 0 : i64, scratch_operands = 1 : i64, tpu.core_type = #tpu.core_type<tc>, window_params = [{transform_indices = @transform_0, window_bounds = array<i64: 16, 128>}, {pipeline_mode = #tpu.pipeline_mode<synchronous>, transform_indices = @transform_1, window_bounds = array<i64: 8, 8>}, {transform_indices = @transform_2, window_bounds = array<i64: 1, 1, 128>}, {transform_indices = @transform_3, window_bounds = array<i64: 1, 1, 128>}, {transform_indices = @transform_4, window_bounds = array<i64: 1, 128, 384>}, {transform_indices = @transform_5, window_bounds = array<i64: 1, 32, 128>}, {transform_indices = @transform_6, window_bounds = array<i64: 1, 1, 128>}, {transform_indices = @transform_7, window_bounds = array<i64: 1, 1, 128>}, {transform_indices = @transform_8, window_bounds = array<i64: 1, 1, 128>}, {transform_indices = @transform_9, window_bounds = array<i64: 1, 128, 128>}, {transform_indices = @transform_10, window_bounds = array<i64: 1, 1, 128>}, {transform_indices = @transform_11, window_bounds = array<i64: 1, 128, 128>}, {transform_indices = @transform_12, window_bounds = array<i64: 1, 1, 128>}, {pipeline_mode = #tpu.pipeline_mode<synchronous>, transform_indices = @transform_13, window_bounds = array<i64: 1, 128>}, {pipeline_mode = #tpu.pipeline_mode<synchronous>, transform_indices = @transform_14, window_bounds = array<i64: 1, 128>}, {pipeline_mode = #tpu.pipeline_mode<synchronous>, transform_indices = @transform_15, window_bounds = array<i64: 128, 128>}, {pipeline_mode = #tpu.pipeline_mode<synchronous>, transform_indices = @transform_16, window_bounds = array<i64: 1, 128>}, {transform_indices = @transform_17, window_bounds = array<i64: 16, 128>}]} {
    %c0_i32 = arith.constant 0 : i32
    %0 = arith.cmpi eq, %arg1, %c0_i32 : i32
    %1 = arith.extui %0 : i1 to i32
    %c0_i32_0 = arith.constant 0 : i32
    %2 = arith.cmpi ne, %1, %c0_i32_0 : i32
    scf.if %2 {
      %c0_87 = arith.constant 0 : index
      %c0_88 = arith.constant 0 : index
      %240 = vector.load %arg2[%c0_87, %c0_88] : memref<16x128xf32, #tpu.memory_space<vmem>>, vector<16x128xf32>
      %c0_89 = arith.constant 0 : index
      %c0_90 = arith.constant 0 : index
      %241 = vector.load %arg20[%c0_89, %c0_90] : memref<16x128xf32, #tpu.memory_space<vmem>>, vector<16x128xf32>
      tpu.vector_store %arg20[%c0_89, %c0_90], %240 {strides = array<i32>} : memref<16x128xf32, #tpu.memory_space<vmem>>, vector<16x128xf32>,
    } else {
    }
    %c0 = arith.constant 0 : index
    %c0_1 = arith.constant 0 : index
    %3 = vector.load %arg20[%c0, %c0_1] : memref<16x128xf32, #tpu.memory_space<vmem>>, vector<16x128xf32>
    %c0_2 = arith.constant 0 : index
    %c0_3 = arith.constant 0 : index
    %c0_4 = arith.constant 0 : index
    %4 = vector.load %arg4[%c0_2, %c0_3, %c0_4] : memref<1x1x128xf32, #tpu.memory_space<vmem>>, vector<1x1x128xf32>
    %5 = vector.shape_cast %4 : vector<1x1x128xf32> to vector<1x128xf32>
    %c0_5 = arith.constant 0 : index
    %c0_6 = arith.constant 0 : index
    %c0_7 = arith.constant 0 : index
    %6 = vector.load %arg5[%c0_5, %c0_6, %c0_7] : memref<1x1x128xf32, #tpu.memory_space<vmem>>, vector<1x1x128xf32>
    %7 = vector.shape_cast %6 : vector<1x1x128xf32> to vector<1x128xf32>
    %cst = arith.constant dense<0.000000e+00> : vector<16xf32>
    %8 = vector.multi_reduction <add>, %3, %cst [1] : vector<16x128xf32> to vector<16xf32>
    %9 = vector.shape_cast %8 : vector<16xf32> to vector<16x1xf32>
    %cst_8 = arith.constant 3.125000e-02 : f32
    %10 = vector.broadcast %cst_8 : f32 to vector<16x1xf32>
    %11 = arith.mulf %9, %10 : vector<16x1xf32>
    %12 = arith.mulf %3, %3 : vector<16x128xf32>
    %cst_9 = arith.constant dense<0.000000e+00> : vector<16xf32>
    %13 = vector.multi_reduction <add>, %12, %cst_9 [1] : vector<16x128xf32> to vector<16xf32>
    %14 = vector.shape_cast %13 : vector<16xf32> to vector<16x1xf32>
    %cst_10 = arith.constant 3.125000e-02 : f32
    %15 = vector.broadcast %cst_10 : f32 to vector<16x1xf32>
    %16 = arith.mulf %14, %15 : vector<16x1xf32>
    %17 = arith.mulf %11, %11 : vector<16x1xf32>
    %18 = arith.subf %16, %17 : vector<16x1xf32>
    %19 = vector.broadcast %11 : vector<16x1xf32> to vector<16x128xf32>
    %20 = arith.subf %3, %19 : vector<16x128xf32>
    %cst_11 = arith.constant 9.99999974E-6 : f32
    %21 = vector.broadcast %cst_11 : f32 to vector<16x1xf32>
    %22 = arith.addf %18, %21 : vector<16x1xf32>
    %23 = math.rsqrt %22 : vector<16x1xf32>
    %24 = vector.broadcast %23 : vector<16x1xf32> to vector<16x128xf32>
    %25 = arith.mulf %20, %24 : vector<16x128xf32>
    %26 = vector.broadcast %5 : vector<1x128xf32> to vector<16x128xf32>
    %27 = arith.mulf %25, %26 : vector<16x128xf32>
    %28 = vector.broadcast %7 : vector<1x128xf32> to vector<16x128xf32>
    %29 = arith.addf %27, %28 : vector<16x128xf32>
    %30 = arith.truncf %29 : vector<16x128xf32> to vector<16x128xbf16>
    %c0_12 = arith.constant 0 : index
    %c0_13 = arith.constant 0 : index
    %c0_14 = arith.constant 0 : index
    %31 = vector.load %arg6[%c0_12, %c0_13, %c0_14] : memref<1x128x384xbf16, #tpu.memory_space<vmem>>, vector<1x128x384xbf16>
    %32 = vector.shape_cast %31 : vector<1x128x384xbf16> to vector<128x384xbf16>
    %cst_15 = arith.constant dense<0.000000e+00> : vector<16x384xf32>
    %33 = tpu.matmul %30, %32, %cst_15 {dimension_numbers = #tpu.dot_dimension_numbers<[1], [0], [0], [1], [0, 0, 1, 1], [], []>} : vector<16x128xbf16>, vector<128x384xbf16>, vector<16x384xf32> -> vector<16x384xf32>
    %34 = vector.extract_strided_slice %33 {offsets = [0, 0], sizes = [16, 32], strides = [1, 1]} : vector<16x384xf32> to vector<16x32xf32>
    %cst_16 = arith.constant 0.353553385 : f32
    %35 = vector.broadcast %cst_16 : f32 to vector<16x32xf32>
    %36 = arith.mulf %34, %35 : vector<16x32xf32>
    %37 = arith.truncf %36 : vector<16x32xf32> to vector<16x32xbf16>
    %38 = vector.extract_strided_slice %33 {offsets = [0, 128], sizes = [16, 32], strides = [1, 1]} : vector<16x384xf32> to vector<16x32xf32>
    %39 = arith.truncf %38 : vector<16x32xf32> to vector<16x32xbf16>
    %40 = vector.extract_strided_slice %33 {offsets = [0, 256], sizes = [16, 32], strides = [1, 1]} : vector<16x384xf32> to vector<16x32xf32>
    %41 = arith.truncf %40 : vector<16x32xf32> to vector<16x32xbf16>
    %c0_17 = arith.constant 0 : index
    %c0_18 = arith.constant 0 : index
    %42 = vector.load %arg3[%c0_17, %c0_18] : memref<8x8xf32, #tpu.memory_space<vmem>>, vector<8x8xf32>
    %43 = vector.extract_strided_slice %37 {offsets = [0, 0], sizes = [8, 8], strides = [1, 1]} : vector<16x32xbf16> to vector<8x8xbf16>
    %44 = vector.extract_strided_slice %39 {offsets = [0, 0], sizes = [8, 8], strides = [1, 1]} : vector<16x32xbf16> to vector<8x8xbf16>
    %45 = vector.extract_strided_slice %41 {offsets = [0, 0], sizes = [8, 8], strides = [1, 1]} : vector<16x32xbf16> to vector<8x8xbf16>
    %cst_19 = arith.constant dense<0.000000e+00> : vector<8x8xf32>
    %46 = tpu.matmul %43, %44, %cst_19 {dimension_numbers = #tpu.dot_dimension_numbers<[1], [1], [0], [0], [0, 0, 1, 0], [], []>} : vector<8x8xbf16>, vector<8x8xbf16>, vector<8x8xf32> -> vector<8x8xf32>
    %47 = arith.addf %46, %42 : vector<8x8xf32>
    %cst_20 = arith.constant dense<0xFF800000> : vector<8xf32>
    %48 = vector.multi_reduction <maximumf>, %47, %cst_20 [1] : vector<8x8xf32> to vector<8xf32>
    %49 = vector.shape_cast %48 : vector<8xf32> to vector<8x1xf32>
    %50 = vector.broadcast %49 : vector<8x1xf32> to vector<8x8xf32>
    %51 = arith.subf %47, %50 : vector<8x8xf32>
    %52 = math.exp %51 : vector<8x8xf32>
    %cst_21 = arith.constant dense<0.000000e+00> : vector<8xf32>
    %53 = vector.multi_reduction <add>, %52, %cst_21 [1] : vector<8x8xf32> to vector<8xf32>
    %54 = vector.shape_cast %53 : vector<8xf32> to vector<8x1xf32>
    %55 = tpu.reciprocal %54 {approx = true} : vector<8x1xf32> -> vector<8x1xf32>
    %56 = vector.broadcast %55 : vector<8x1xf32> to vector<8x8xf32>
    %57 = arith.mulf %52, %56 : vector<8x8xf32>
    %58 = arith.truncf %57 : vector<8x8xf32> to vector<8x8xbf16>
    %cst_22 = arith.constant dense<0.000000e+00> : vector<8x8xf32>
    %59 = tpu.matmul %58, %45, %cst_22 {dimension_numbers = #tpu.dot_dimension_numbers<[1], [0], [0], [1], [0, 0, 1, 1], [], []>} : vector<8x8xbf16>, vector<8x8xbf16>, vector<8x8xf32> -> vector<8x8xf32>
    %60 = vector.extract_strided_slice %37 {offsets = [0, 8], sizes = [8, 8], strides = [1, 1]} : vector<16x32xbf16> to vector<8x8xbf16>
    %61 = vector.extract_strided_slice %39 {offsets = [0, 8], sizes = [8, 8], strides = [1, 1]} : vector<16x32xbf16> to vector<8x8xbf16>
    %62 = vector.extract_strided_slice %41 {offsets = [0, 8], sizes = [8, 8], strides = [1, 1]} : vector<16x32xbf16> to vector<8x8xbf16>
    %cst_23 = arith.constant dense<0.000000e+00> : vector<8x8xf32>
    %63 = tpu.matmul %60, %61, %cst_23 {dimension_numbers = #tpu.dot_dimension_numbers<[1], [1], [0], [0], [0, 0, 1, 0], [], []>} : vector<8x8xbf16>, vector<8x8xbf16>, vector<8x8xf32> -> vector<8x8xf32>
    %64 = arith.addf %63, %42 : vector<8x8xf32>
    %cst_24 = arith.constant dense<0xFF800000> : vector<8xf32>
    %65 = vector.multi_reduction <maximumf>, %64, %cst_24 [1] : vector<8x8xf32> to vector<8xf32>
    %66 = vector.shape_cast %65 : vector<8xf32> to vector<8x1xf32>
    %67 = vector.broadcast %66 : vector<8x1xf32> to vector<8x8xf32>
    %68 = arith.subf %64, %67 : vector<8x8xf32>
    %69 = math.exp %68 : vector<8x8xf32>
    %cst_25 = arith.constant dense<0.000000e+00> : vector<8xf32>
    %70 = vector.multi_reduction <add>, %69, %cst_25 [1] : vector<8x8xf32> to vector<8xf32>
    %71 = vector.shape_cast %70 : vector<8xf32> to vector<8x1xf32>
    %72 = tpu.reciprocal %71 {approx = true} : vector<8x1xf32> -> vector<8x1xf32>
    %73 = vector.broadcast %72 : vector<8x1xf32> to vector<8x8xf32>
    %74 = arith.mulf %69, %73 : vector<8x8xf32>
    %75 = arith.truncf %74 : vector<8x8xf32> to vector<8x8xbf16>
    %cst_26 = arith.constant dense<0.000000e+00> : vector<8x8xf32>
    %76 = tpu.matmul %75, %62, %cst_26 {dimension_numbers = #tpu.dot_dimension_numbers<[1], [0], [0], [1], [0, 0, 1, 1], [], []>} : vector<8x8xbf16>, vector<8x8xbf16>, vector<8x8xf32> -> vector<8x8xf32>
    %77 = vector.extract_strided_slice %37 {offsets = [0, 16], sizes = [8, 8], strides = [1, 1]} : vector<16x32xbf16> to vector<8x8xbf16>
    %78 = vector.extract_strided_slice %39 {offsets = [0, 16], sizes = [8, 8], strides = [1, 1]} : vector<16x32xbf16> to vector<8x8xbf16>
    %79 = vector.extract_strided_slice %41 {offsets = [0, 16], sizes = [8, 8], strides = [1, 1]} : vector<16x32xbf16> to vector<8x8xbf16>
    %cst_27 = arith.constant dense<0.000000e+00> : vector<8x8xf32>
    %80 = tpu.matmul %77, %78, %cst_27 {dimension_numbers = #tpu.dot_dimension_numbers<[1], [1], [0], [0], [0, 0, 1, 0], [], []>} : vector<8x8xbf16>, vector<8x8xbf16>, vector<8x8xf32> -> vector<8x8xf32>
    %81 = arith.addf %80, %42 : vector<8x8xf32>
    %cst_28 = arith.constant dense<0xFF800000> : vector<8xf32>
    %82 = vector.multi_reduction <maximumf>, %81, %cst_28 [1] : vector<8x8xf32> to vector<8xf32>
    %83 = vector.shape_cast %82 : vector<8xf32> to vector<8x1xf32>
    %84 = vector.broadcast %83 : vector<8x1xf32> to vector<8x8xf32>
    %85 = arith.subf %81, %84 : vector<8x8xf32>
    %86 = math.exp %85 : vector<8x8xf32>
    %cst_29 = arith.constant dense<0.000000e+00> : vector<8xf32>
    %87 = vector.multi_reduction <add>, %86, %cst_29 [1] : vector<8x8xf32> to vector<8xf32>
    %88 = vector.shape_cast %87 : vector<8xf32> to vector<8x1xf32>
    %89 = tpu.reciprocal %88 {approx = true} : vector<8x1xf32> -> vector<8x1xf32>
    %90 = vector.broadcast %89 : vector<8x1xf32> to vector<8x8xf32>
    %91 = arith.mulf %86, %90 : vector<8x8xf32>
    %92 = arith.truncf %91 : vector<8x8xf32> to vector<8x8xbf16>
    %cst_30 = arith.constant dense<0.000000e+00> : vector<8x8xf32>
    %93 = tpu.matmul %92, %79, %cst_30 {dimension_numbers = #tpu.dot_dimension_numbers<[1], [0], [0], [1], [0, 0, 1, 1], [], []>} : vector<8x8xbf16>, vector<8x8xbf16>, vector<8x8xf32> -> vector<8x8xf32>
    %94 = vector.extract_strided_slice %37 {offsets = [0, 24], sizes = [8, 8], strides = [1, 1]} : vector<16x32xbf16> to vector<8x8xbf16>
    %95 = vector.extract_strided_slice %39 {offsets = [0, 24], sizes = [8, 8], strides = [1, 1]} : vector<16x32xbf16> to vector<8x8xbf16>
    %96 = vector.extract_strided_slice %41 {offsets = [0, 24], sizes = [8, 8], strides = [1, 1]} : vector<16x32xbf16> to vector<8x8xbf16>
    %cst_31 = arith.constant dense<0.000000e+00> : vector<8x8xf32>
    %97 = tpu.matmul %94, %95, %cst_31 {dimension_numbers = #tpu.dot_dimension_numbers<[1], [1], [0], [0], [0, 0, 1, 0], [], []>} : vector<8x8xbf16>, vector<8x8xbf16>, vector<8x8xf32> -> vector<8x8xf32>
    %98 = arith.addf %97, %42 : vector<8x8xf32>
    %cst_32 = arith.constant dense<0xFF800000> : vector<8xf32>
    %99 = vector.multi_reduction <maximumf>, %98, %cst_32 [1] : vector<8x8xf32> to vector<8xf32>
    %100 = vector.shape_cast %99 : vector<8xf32> to vector<8x1xf32>
    %101 = vector.broadcast %100 : vector<8x1xf32> to vector<8x8xf32>
    %102 = arith.subf %98, %101 : vector<8x8xf32>
    %103 = math.exp %102 : vector<8x8xf32>
    %cst_33 = arith.constant dense<0.000000e+00> : vector<8xf32>
    %104 = vector.multi_reduction <add>, %103, %cst_33 [1] : vector<8x8xf32> to vector<8xf32>
    %105 = vector.shape_cast %104 : vector<8xf32> to vector<8x1xf32>
    %106 = tpu.reciprocal %105 {approx = true} : vector<8x1xf32> -> vector<8x1xf32>
    %107 = vector.broadcast %106 : vector<8x1xf32> to vector<8x8xf32>
    %108 = arith.mulf %103, %107 : vector<8x8xf32>
    %109 = arith.truncf %108 : vector<8x8xf32> to vector<8x8xbf16>
    %cst_34 = arith.constant dense<0.000000e+00> : vector<8x8xf32>
    %110 = tpu.matmul %109, %96, %cst_34 {dimension_numbers = #tpu.dot_dimension_numbers<[1], [0], [0], [1], [0, 0, 1, 1], [], []>} : vector<8x8xbf16>, vector<8x8xbf16>, vector<8x8xf32> -> vector<8x8xf32>
    %111 = tpu.concatenate %59, %76, %93, %110 in 1 : vector<8x8xf32>, vector<8x8xf32>, vector<8x8xf32>, vector<8x8xf32> -> vector<8x32xf32>
    %112 = vector.extract_strided_slice %37 {offsets = [8, 0], sizes = [8, 8], strides = [1, 1]} : vector<16x32xbf16> to vector<8x8xbf16>
    %113 = vector.extract_strided_slice %39 {offsets = [8, 0], sizes = [8, 8], strides = [1, 1]} : vector<16x32xbf16> to vector<8x8xbf16>
    %114 = vector.extract_strided_slice %41 {offsets = [8, 0], sizes = [8, 8], strides = [1, 1]} : vector<16x32xbf16> to vector<8x8xbf16>
    %cst_35 = arith.constant dense<0.000000e+00> : vector<8x8xf32>
    %115 = tpu.matmul %112, %113, %cst_35 {dimension_numbers = #tpu.dot_dimension_numbers<[1], [1], [0], [0], [0, 0, 1, 0], [], []>} : vector<8x8xbf16>, vector<8x8xbf16>, vector<8x8xf32> -> vector<8x8xf32>
    %116 = arith.addf %115, %42 : vector<8x8xf32>
    %cst_36 = arith.constant dense<0xFF800000> : vector<8xf32>
    %117 = vector.multi_reduction <maximumf>, %116, %cst_36 [1] : vector<8x8xf32> to vector<8xf32>
    %118 = vector.shape_cast %117 : vector<8xf32> to vector<8x1xf32>
    %119 = vector.broadcast %118 : vector<8x1xf32> to vector<8x8xf32>
    %120 = arith.subf %116, %119 : vector<8x8xf32>
    %121 = math.exp %120 : vector<8x8xf32>
    %cst_37 = arith.constant dense<0.000000e+00> : vector<8xf32>
    %122 = vector.multi_reduction <add>, %121, %cst_37 [1] : vector<8x8xf32> to vector<8xf32>
    %123 = vector.shape_cast %122 : vector<8xf32> to vector<8x1xf32>
    %124 = tpu.reciprocal %123 {approx = true} : vector<8x1xf32> -> vector<8x1xf32>
    %125 = vector.broadcast %124 : vector<8x1xf32> to vector<8x8xf32>
    %126 = arith.mulf %121, %125 : vector<8x8xf32>
    %127 = arith.truncf %126 : vector<8x8xf32> to vector<8x8xbf16>
    %cst_38 = arith.constant dense<0.000000e+00> : vector<8x8xf32>
    %128 = tpu.matmul %127, %114, %cst_38 {dimension_numbers = #tpu.dot_dimension_numbers<[1], [0], [0], [1], [0, 0, 1, 1], [], []>} : vector<8x8xbf16>, vector<8x8xbf16>, vector<8x8xf32> -> vector<8x8xf32>
    %129 = vector.extract_strided_slice %37 {offsets = [8, 8], sizes = [8, 8], strides = [1, 1]} : vector<16x32xbf16> to vector<8x8xbf16>
    %130 = vector.extract_strided_slice %39 {offsets = [8, 8], sizes = [8, 8], strides = [1, 1]} : vector<16x32xbf16> to vector<8x8xbf16>
    %131 = vector.extract_strided_slice %41 {offsets = [8, 8], sizes = [8, 8], strides = [1, 1]} : vector<16x32xbf16> to vector<8x8xbf16>
    %cst_39 = arith.constant dense<0.000000e+00> : vector<8x8xf32>
    %132 = tpu.matmul %129, %130, %cst_39 {dimension_numbers = #tpu.dot_dimension_numbers<[1], [1], [0], [0], [0, 0, 1, 0], [], []>} : vector<8x8xbf16>, vector<8x8xbf16>, vector<8x8xf32> -> vector<8x8xf32>
    %133 = arith.addf %132, %42 : vector<8x8xf32>
    %cst_40 = arith.constant dense<0xFF800000> : vector<8xf32>
    %134 = vector.multi_reduction <maximumf>, %133, %cst_40 [1] : vector<8x8xf32> to vector<8xf32>
    %135 = vector.shape_cast %134 : vector<8xf32> to vector<8x1xf32>
    %136 = vector.broadcast %135 : vector<8x1xf32> to vector<8x8xf32>
    %137 = arith.subf %133, %136 : vector<8x8xf32>
    %138 = math.exp %137 : vector<8x8xf32>
    %cst_41 = arith.constant dense<0.000000e+00> : vector<8xf32>
    %139 = vector.multi_reduction <add>, %138, %cst_41 [1] : vector<8x8xf32> to vector<8xf32>
    %140 = vector.shape_cast %139 : vector<8xf32> to vector<8x1xf32>
    %141 = tpu.reciprocal %140 {approx = true} : vector<8x1xf32> -> vector<8x1xf32>
    %142 = vector.broadcast %141 : vector<8x1xf32> to vector<8x8xf32>
    %143 = arith.mulf %138, %142 : vector<8x8xf32>
    %144 = arith.truncf %143 : vector<8x8xf32> to vector<8x8xbf16>
    %cst_42 = arith.constant dense<0.000000e+00> : vector<8x8xf32>
    %145 = tpu.matmul %144, %131, %cst_42 {dimension_numbers = #tpu.dot_dimension_numbers<[1], [0], [0], [1], [0, 0, 1, 1], [], []>} : vector<8x8xbf16>, vector<8x8xbf16>, vector<8x8xf32> -> vector<8x8xf32>
    %146 = vector.extract_strided_slice %37 {offsets = [8, 16], sizes = [8, 8], strides = [1, 1]} : vector<16x32xbf16> to vector<8x8xbf16>
    %147 = vector.extract_strided_slice %39 {offsets = [8, 16], sizes = [8, 8], strides = [1, 1]} : vector<16x32xbf16> to vector<8x8xbf16>
    %148 = vector.extract_strided_slice %41 {offsets = [8, 16], sizes = [8, 8], strides = [1, 1]} : vector<16x32xbf16> to vector<8x8xbf16>
    %cst_43 = arith.constant dense<0.000000e+00> : vector<8x8xf32>
    %149 = tpu.matmul %146, %147, %cst_43 {dimension_numbers = #tpu.dot_dimension_numbers<[1], [1], [0], [0], [0, 0, 1, 0], [], []>} : vector<8x8xbf16>, vector<8x8xbf16>, vector<8x8xf32> -> vector<8x8xf32>
    %150 = arith.addf %149, %42 : vector<8x8xf32>
    %cst_44 = arith.constant dense<0xFF800000> : vector<8xf32>
    %151 = vector.multi_reduction <maximumf>, %150, %cst_44 [1] : vector<8x8xf32> to vector<8xf32>
    %152 = vector.shape_cast %151 : vector<8xf32> to vector<8x1xf32>
    %153 = vector.broadcast %152 : vector<8x1xf32> to vector<8x8xf32>
    %154 = arith.subf %150, %153 : vector<8x8xf32>
    %155 = math.exp %154 : vector<8x8xf32>
    %cst_45 = arith.constant dense<0.000000e+00> : vector<8xf32>
    %156 = vector.multi_reduction <add>, %155, %cst_45 [1] : vector<8x8xf32> to vector<8xf32>
    %157 = vector.shape_cast %156 : vector<8xf32> to vector<8x1xf32>
    %158 = tpu.reciprocal %157 {approx = true} : vector<8x1xf32> -> vector<8x1xf32>
    %159 = vector.broadcast %158 : vector<8x1xf32> to vector<8x8xf32>
    %160 = arith.mulf %155, %159 : vector<8x8xf32>
    %161 = arith.truncf %160 : vector<8x8xf32> to vector<8x8xbf16>
    %cst_46 = arith.constant dense<0.000000e+00> : vector<8x8xf32>
    %162 = tpu.matmul %161, %148, %cst_46 {dimension_numbers = #tpu.dot_dimension_numbers<[1], [0], [0], [1], [0, 0, 1, 1], [], []>} : vector<8x8xbf16>, vector<8x8xbf16>, vector<8x8xf32> -> vector<8x8xf32>
    %163 = vector.extract_strided_slice %37 {offsets = [8, 24], sizes = [8, 8], strides = [1, 1]} : vector<16x32xbf16> to vector<8x8xbf16>
    %164 = vector.extract_strided_slice %39 {offsets = [8, 24], sizes = [8, 8], strides = [1, 1]} : vector<16x32xbf16> to vector<8x8xbf16>
    %165 = vector.extract_strided_slice %41 {offsets = [8, 24], sizes = [8, 8], strides = [1, 1]} : vector<16x32xbf16> to vector<8x8xbf16>
    %cst_47 = arith.constant dense<0.000000e+00> : vector<8x8xf32>
    %166 = tpu.matmul %163, %164, %cst_47 {dimension_numbers = #tpu.dot_dimension_numbers<[1], [1], [0], [0], [0, 0, 1, 0], [], []>} : vector<8x8xbf16>, vector<8x8xbf16>, vector<8x8xf32> -> vector<8x8xf32>
    %167 = arith.addf %166, %42 : vector<8x8xf32>
    %cst_48 = arith.constant dense<0xFF800000> : vector<8xf32>
    %168 = vector.multi_reduction <maximumf>, %167, %cst_48 [1] : vector<8x8xf32> to vector<8xf32>
    %169 = vector.shape_cast %168 : vector<8xf32> to vector<8x1xf32>
    %170 = vector.broadcast %169 : vector<8x1xf32> to vector<8x8xf32>
    %171 = arith.subf %167, %170 : vector<8x8xf32>
    %172 = math.exp %171 : vector<8x8xf32>
    %cst_49 = arith.constant dense<0.000000e+00> : vector<8xf32>
    %173 = vector.multi_reduction <add>, %172, %cst_49 [1] : vector<8x8xf32> to vector<8xf32>
    %174 = vector.shape_cast %173 : vector<8xf32> to vector<8x1xf32>
    %175 = tpu.reciprocal %174 {approx = true} : vector<8x1xf32> -> vector<8x1xf32>
    %176 = vector.broadcast %175 : vector<8x1xf32> to vector<8x8xf32>
    %177 = arith.mulf %172, %176 : vector<8x8xf32>
    %178 = arith.truncf %177 : vector<8x8xf32> to vector<8x8xbf16>
    %cst_50 = arith.constant dense<0.000000e+00> : vector<8x8xf32>
    %179 = tpu.matmul %178, %165, %cst_50 {dimension_numbers = #tpu.dot_dimension_numbers<[1], [0], [0], [1], [0, 0, 1, 1], [], []>} : vector<8x8xbf16>, vector<8x8xbf16>, vector<8x8xf32> -> vector<8x8xf32>
    %180 = tpu.concatenate %128, %145, %162, %179 in 1 : vector<8x8xf32>, vector<8x8xf32>, vector<8x8xf32>, vector<8x8xf32> -> vector<8x32xf32>
    %181 = tpu.concatenate %111, %180 in 0 : vector<8x32xf32>, vector<8x32xf32> -> vector<16x32xf32>
    %182 = arith.truncf %181 : vector<16x32xf32> to vector<16x32xbf16>
    %c0_51 = arith.constant 0 : index
    %c0_52 = arith.constant 0 : index
    %c0_53 = arith.constant 0 : index
    %183 = vector.load %arg7[%c0_51, %c0_52, %c0_53] : memref<1x32x128xbf16, #tpu.memory_space<vmem>>, vector<1x32x128xbf16>
    %184 = vector.shape_cast %183 : vector<1x32x128xbf16> to vector<32x128xbf16>
    %cst_54 = arith.constant dense<0.000000e+00> : vector<16x128xf32>
    %185 = tpu.matmul %182, %184, %cst_54 {dimension_numbers = #tpu.dot_dimension_numbers<[1], [0], [0], [1], [0, 0, 1, 1], [], []>} : vector<16x32xbf16>, vector<32x128xbf16>, vector<16x128xf32> -> vector<16x128xf32>
    %c0_55 = arith.constant 0 : index
    %c0_56 = arith.constant 0 : index
    %c0_57 = arith.constant 0 : index
    %186 = vector.load %arg8[%c0_55, %c0_56, %c0_57] : memref<1x1x128xf32, #tpu.memory_space<vmem>>, vector<1x1x128xf32>
    %187 = vector.shape_cast %186 : vector<1x1x128xf32> to vector<1x128xf32>
    %188 = vector.broadcast %187 : vector<1x128xf32> to vector<16x128xf32>
    %189 = arith.addf %185, %188 : vector<16x128xf32>
    %190 = arith.addf %3, %189 : vector<16x128xf32>
    %c0_58 = arith.constant 0 : index
    %c0_59 = arith.constant 0 : index
    %c0_60 = arith.constant 0 : index
    %191 = vector.load %arg9[%c0_58, %c0_59, %c0_60] : memref<1x1x128xf32, #tpu.memory_space<vmem>>, vector<1x1x128xf32>
    %192 = vector.shape_cast %191 : vector<1x1x128xf32> to vector<1x128xf32>
    %c0_61 = arith.constant 0 : index
    %c0_62 = arith.constant 0 : index
    %c0_63 = arith.constant 0 : index
    %193 = vector.load %arg10[%c0_61, %c0_62, %c0_63] : memref<1x1x128xf32, #tpu.memory_space<vmem>>, vector<1x1x128xf32>
    %194 = vector.shape_cast %193 : vector<1x1x128xf32> to vector<1x128xf32>
    %cst_64 = arith.constant dense<0.000000e+00> : vector<16xf32>
    %195 = vector.multi_reduction <add>, %190, %cst_64 [1] : vector<16x128xf32> to vector<16xf32>
    %196 = vector.shape_cast %195 : vector<16xf32> to vector<16x1xf32>
    %cst_65 = arith.constant 3.125000e-02 : f32
    %197 = vector.broadcast %cst_65 : f32 to vector<16x1xf32>
    %198 = arith.mulf %196, %197 : vector<16x1xf32>
    %199 = arith.mulf %190, %190 : vector<16x128xf32>
    %cst_66 = arith.constant dense<0.000000e+00> : vector<16xf32>
    %200 = vector.multi_reduction <add>, %199, %cst_66 [1] : vector<16x128xf32> to vector<16xf32>
    %201 = vector.shape_cast %200 : vector<16xf32> to vector<16x1xf32>
    %cst_67 = arith.constant 3.125000e-02 : f32
    %202 = vector.broadcast %cst_67 : f32 to vector<16x1xf32>
    %203 = arith.mulf %201, %202 : vector<16x1xf32>
    %204 = arith.mulf %198, %198 : vector<16x1xf32>
    %205 = arith.subf %203, %204 : vector<16x1xf32>
    %206 = vector.broadcast %198 : vector<16x1xf32> to vector<16x128xf32>
    %207 = arith.subf %190, %206 : vector<16x128xf32>
    %cst_68 = arith.constant 9.99999974E-6 : f32
    %208 = vector.broadcast %cst_68 : f32 to vector<16x1xf32>
    %209 = arith.addf %205, %208 : vector<16x1xf32>
    %210 = math.rsqrt %209 : vector<16x1xf32>
    %211 = vector.broadcast %210 : vector<16x1xf32> to vector<16x128xf32>
    %212 = arith.mulf %207, %211 : vector<16x128xf32>
    %213 = vector.broadcast %192 : vector<1x128xf32> to vector<16x128xf32>
    %214 = arith.mulf %212, %213 : vector<16x128xf32>
    %215 = vector.broadcast %194 : vector<1x128xf32> to vector<16x128xf32>
    %216 = arith.addf %214, %215 : vector<16x128xf32>
    %217 = arith.truncf %216 : vector<16x128xf32> to vector<16x128xbf16>
    %c0_69 = arith.constant 0 : index
    %c0_70 = arith.constant 0 : index
    %c0_71 = arith.constant 0 : index
    %218 = vector.load %arg11[%c0_69, %c0_70, %c0_71] : memref<1x128x128xbf16, #tpu.memory_space<vmem>>, vector<1x128x128xbf16>
    %219 = vector.shape_cast %218 : vector<1x128x128xbf16> to vector<128x128xbf16>
    %cst_72 = arith.constant dense<0.000000e+00> : vector<16x128xf32>
    %220 = tpu.matmul %217, %219, %cst_72 {dimension_numbers = #tpu.dot_dimension_numbers<[1], [0], [0], [1], [0, 0, 1, 1], [], []>} : vector<16x128xbf16>, vector<128x128xbf16>, vector<16x128xf32> -> vector<16x128xf32>
    %c0_73 = arith.constant 0 : index
    %c0_74 = arith.constant 0 : index
    %c0_75 = arith.constant 0 : index
    %221 = vector.load %arg12[%c0_73, %c0_74, %c0_75] : memref<1x1x128xf32, #tpu.memory_space<vmem>>, vector<1x1x128xf32>
    %222 = vector.shape_cast %221 : vector<1x1x128xf32> to vector<1x128xf32>
    %223 = vector.broadcast %222 : vector<1x128xf32> to vector<16x128xf32>
    %224 = arith.addf %220, %223 : vector<16x128xf32>
    %cst_76 = arith.constant 0.000000e+00 : f32
    %225 = vector.broadcast %cst_76 : f32 to vector<16x128xf32>
    %226 = arith.maximumf %224, %225 : vector<16x128xf32>
    %227 = arith.truncf %226 : vector<16x128xf32> to vector<16x128xbf16>
    %c0_77 = arith.constant 0 : index
    %c0_78 = arith.constant 0 : index
    %c0_79 = arith.constant 0 : index
    %228 = vector.load %arg13[%c0_77, %c0_78, %c0_79] : memref<1x128x128xbf16, #tpu.memory_space<vmem>>, vector<1x128x128xbf16>
    %229 = vector.shape_cast %228 : vector<1x128x128xbf16> to vector<128x128xbf16>
    %cst_80 = arith.constant dense<0.000000e+00> : vector<16x128xf32>
    %230 = tpu.matmul %227, %229, %cst_80 {dimension_numbers = #tpu.dot_dimension_numbers<[1], [0], [0], [1], [0, 0, 1, 1], [], []>} : vector<16x128xbf16>, vector<128x128xbf16>, vector<16x128xf32> -> vector<16x128xf32>
    %c0_81 = arith.constant 0 : index
    %c0_82 = arith.constant 0 : index
    %c0_83 = arith.constant 0 : index
    %231 = vector.load %arg14[%c0_81, %c0_82, %c0_83] : memref<1x1x128xf32, #tpu.memory_space<vmem>>, vector<1x1x128xf32>
    %232 = vector.shape_cast %231 : vector<1x1x128xf32> to vector<1x128xf32>
    %233 = vector.broadcast %232 : vector<1x128xf32> to vector<16x128xf32>
    %234 = arith.addf %230, %233 : vector<16x128xf32>
    %235 = arith.addf %190, %234 : vector<16x128xf32>
    %c0_84 = arith.constant 0 : index
    %c0_85 = arith.constant 0 : index
    %236 = vector.load %arg20[%c0_84, %c0_85] : memref<16x128xf32, #tpu.memory_space<vmem>>, vector<16x128xf32>
    tpu.vector_store %arg20[%c0_84, %c0_85], %235 {strides = array<i32>} : memref<16x128xf32, #tpu.memory_space<vmem>>, vector<16x128xf32>,
    %c1_i32 = arith.constant 1 : i32
    %237 = arith.cmpi eq, %arg1, %c1_i32 : i32
    %238 = arith.extui %237 : i1 to i32
    %c0_i32_86 = arith.constant 0 : i32
    %239 = arith.cmpi ne, %238, %c0_i32_86 : i32
    scf.if %239 {
      %c0_87 = arith.constant 0 : index
      %c0_88 = arith.constant 0 : index
      %240 = vector.load %arg15[%c0_87, %c0_88] : memref<1x128xf32, #tpu.memory_space<vmem>>, vector<1x128xf32>
      %c0_89 = arith.constant 0 : index
      %c0_90 = arith.constant 0 : index
      %241 = vector.load %arg16[%c0_89, %c0_90] : memref<1x128xf32, #tpu.memory_space<vmem>>, vector<1x128xf32>
      %cst_91 = arith.constant dense<0.000000e+00> : vector<16xf32>
      %242 = vector.multi_reduction <add>, %235, %cst_91 [1] : vector<16x128xf32> to vector<16xf32>
      %243 = vector.shape_cast %242 : vector<16xf32> to vector<16x1xf32>
      %cst_92 = arith.constant 3.125000e-02 : f32
      %244 = vector.broadcast %cst_92 : f32 to vector<16x1xf32>
      %245 = arith.mulf %243, %244 : vector<16x1xf32>
      %246 = arith.mulf %235, %235 : vector<16x128xf32>
      %cst_93 = arith.constant dense<0.000000e+00> : vector<16xf32>
      %247 = vector.multi_reduction <add>, %246, %cst_93 [1] : vector<16x128xf32> to vector<16xf32>
      %248 = vector.shape_cast %247 : vector<16xf32> to vector<16x1xf32>
      %cst_94 = arith.constant 3.125000e-02 : f32
      %249 = vector.broadcast %cst_94 : f32 to vector<16x1xf32>
      %250 = arith.mulf %248, %249 : vector<16x1xf32>
      %251 = arith.mulf %245, %245 : vector<16x1xf32>
      %252 = arith.subf %250, %251 : vector<16x1xf32>
      %253 = vector.broadcast %245 : vector<16x1xf32> to vector<16x128xf32>
      %254 = arith.subf %235, %253 : vector<16x128xf32>
      %cst_95 = arith.constant 9.99999974E-6 : f32
      %255 = vector.broadcast %cst_95 : f32 to vector<16x1xf32>
      %256 = arith.addf %252, %255 : vector<16x1xf32>
      %257 = math.rsqrt %256 : vector<16x1xf32>
      %258 = vector.broadcast %257 : vector<16x1xf32> to vector<16x128xf32>
      %259 = arith.mulf %254, %258 : vector<16x128xf32>
      %260 = vector.broadcast %240 : vector<1x128xf32> to vector<16x128xf32>
      %261 = arith.mulf %259, %260 : vector<16x128xf32>
      %262 = vector.broadcast %241 : vector<1x128xf32> to vector<16x128xf32>
      %263 = arith.addf %261, %262 : vector<16x128xf32>
      %264 = arith.truncf %263 : vector<16x128xf32> to vector<16x128xbf16>
      %c0_96 = arith.constant 0 : index
      %c0_97 = arith.constant 0 : index
      %265 = vector.load %arg17[%c0_96, %c0_97] : memref<128x128xbf16, #tpu.memory_space<vmem>>, vector<128x128xbf16>
      %cst_98 = arith.constant dense<0.000000e+00> : vector<16x128xf32>
      %266 = tpu.matmul %264, %265, %cst_98 {dimension_numbers = #tpu.dot_dimension_numbers<[1], [0], [0], [1], [0, 0, 1, 1], [], []>} : vector<16x128xbf16>, vector<128x128xbf16>, vector<16x128xf32> -> vector<16x128xf32>
      %c0_99 = arith.constant 0 : index
      %c0_100 = arith.constant 0 : index
      %267 = vector.load %arg18[%c0_99, %c0_100] : memref<1x128xf32, #tpu.memory_space<vmem>>, vector<1x128xf32>
      %268 = vector.broadcast %267 : vector<1x128xf32> to vector<16x128xf32>
      %269 = arith.addf %266, %268 : vector<16x128xf32>
      %c0_101 = arith.constant 0 : index
      %c0_102 = arith.constant 0 : index
      %270 = vector.load %arg19[%c0_101, %c0_102] : memref<16x128xf32, #tpu.memory_space<vmem>>, vector<16x128xf32>
      tpu.vector_store %arg19[%c0_101, %c0_102], %269 {strides = array<i32>} : memref<16x128xf32, #tpu.memory_space<vmem>>, vector<16x128xf32>,
    } else {
    }
    return
  }
  func.func @transform_0(%arg0: i32, %arg1: i32) -> (i32, i32) {
    %c0_i32 = arith.constant 0 : i32
    %c0_i32_0 = arith.constant 0 : i32
    return %arg0, %c0_i32 : i32, i32
  }
  func.func @transform_1(%arg0: i32, %arg1: i32) -> (i32, i32) {
    %c0_i32 = arith.constant 0 : i32
    %c0_i32_0 = arith.constant 0 : i32
    %c0_i32_1 = arith.constant 0 : i32
    return %c0_i32, %c0_i32_0 : i32, i32
  }
  func.func @transform_2(%arg0: i32, %arg1: i32) -> (i32, i32, i32) {
    %c0_i32 = arith.constant 0 : i32
    %c0_i32_0 = arith.constant 0 : i32
    %c0_i32_1 = arith.constant 0 : i32
    return %arg1, %c0_i32, %c0_i32_0 : i32, i32, i32
  }
  func.func @transform_3(%arg0: i32, %arg1: i32) -> (i32, i32, i32) {
    %c0_i32 = arith.constant 0 : i32
    %c0_i32_0 = arith.constant 0 : i32
    %c0_i32_1 = arith.constant 0 : i32
    return %arg1, %c0_i32, %c0_i32_0 : i32, i32, i32
  }
  func.func @transform_4(%arg0: i32, %arg1: i32) -> (i32, i32, i32) {
    %c0_i32 = arith.constant 0 : i32
    %c0_i32_0 = arith.constant 0 : i32
    %c0_i32_1 = arith.constant 0 : i32
    return %arg1, %c0_i32, %c0_i32_0 : i32, i32, i32
  }
  func.func @transform_5(%arg0: i32, %arg1: i32) -> (i32, i32, i32) {
    %c0_i32 = arith.constant 0 : i32
    %c0_i32_0 = arith.constant 0 : i32
    %c0_i32_1 = arith.constant 0 : i32
    return %arg1, %c0_i32, %c0_i32_0 : i32, i32, i32
  }
  func.func @transform_6(%arg0: i32, %arg1: i32) -> (i32, i32, i32) {
    %c0_i32 = arith.constant 0 : i32
    %c0_i32_0 = arith.constant 0 : i32
    %c0_i32_1 = arith.constant 0 : i32
    return %arg1, %c0_i32, %c0_i32_0 : i32, i32, i32
  }
  func.func @transform_7(%arg0: i32, %arg1: i32) -> (i32, i32, i32) {
    %c0_i32 = arith.constant 0 : i32
    %c0_i32_0 = arith.constant 0 : i32
    %c0_i32_1 = arith.constant 0 : i32
    return %arg1, %c0_i32, %c0_i32_0 : i32, i32, i32
  }
  func.func @transform_8(%arg0: i32, %arg1: i32) -> (i32, i32, i32) {
    %c0_i32 = arith.constant 0 : i32
    %c0_i32_0 = arith.constant 0 : i32
    %c0_i32_1 = arith.constant 0 : i32
    return %arg1, %c0_i32, %c0_i32_0 : i32, i32, i32
  }
  func.func @transform_9(%arg0: i32, %arg1: i32) -> (i32, i32, i32) {
    %c0_i32 = arith.constant 0 : i32
    %c0_i32_0 = arith.constant 0 : i32
    %c0_i32_1 = arith.constant 0 : i32
    return %arg1, %c0_i32, %c0_i32_0 : i32, i32, i32
  }
  func.func @transform_10(%arg0: i32, %arg1: i32) -> (i32, i32, i32) {
    %c0_i32 = arith.constant 0 : i32
    %c0_i32_0 = arith.constant 0 : i32
    %c0_i32_1 = arith.constant 0 : i32
    return %arg1, %c0_i32, %c0_i32_0 : i32, i32, i32
  }
  func.func @transform_11(%arg0: i32, %arg1: i32) -> (i32, i32, i32) {
    %c0_i32 = arith.constant 0 : i32
    %c0_i32_0 = arith.constant 0 : i32
    %c0_i32_1 = arith.constant 0 : i32
    return %arg1, %c0_i32, %c0_i32_0 : i32, i32, i32
  }
  func.func @transform_12(%arg0: i32, %arg1: i32) -> (i32, i32, i32) {
    %c0_i32 = arith.constant 0 : i32
    %c0_i32_0 = arith.constant 0 : i32
    %c0_i32_1 = arith.constant 0 : i32
    return %arg1, %c0_i32, %c0_i32_0 : i32, i32, i32
  }
  func.func @transform_13(%arg0: i32, %arg1: i32) -> (i32, i32) {
    %c0_i32 = arith.constant 0 : i32
    %c0_i32_0 = arith.constant 0 : i32
    %c0_i32_1 = arith.constant 0 : i32
    return %c0_i32, %c0_i32_0 : i32, i32
  }
  func.func @transform_14(%arg0: i32, %arg1: i32) -> (i32, i32) {
    %c0_i32 = arith.constant 0 : i32
    %c0_i32_0 = arith.constant 0 : i32
    %c0_i32_1 = arith.constant 0 : i32
    return %c0_i32, %c0_i32_0 : i32, i32
  }
  func.func @transform_15(%arg0: i32, %arg1: i32) -> (i32, i32) {
    %c0_i32 = arith.constant 0 : i32
    %c0_i32_0 = arith.constant 0 : i32
    %c0_i32_1 = arith.constant 0 : i32
    return %c0_i32, %c0_i32_0 : i32, i32
  }
  func.func @transform_16(%arg0: i32, %arg1: i32) -> (i32, i32) {
    %c0_i32 = arith.constant 0 : i32
    %c0_i32_0 = arith.constant 0 : i32
    %c0_i32_1 = arith.constant 0 : i32
    return %c0_i32, %c0_i32_0 : i32, i32
  }
  func.func @transform_17(%arg0: i32, %arg1: i32) -> (i32, i32) {
    %c0_i32 = arith.constant 0 : i32
    %c0_i32_0 = arith.constant 0 : i32
    return %arg0, %c0_i32 : i32, i32
  }
}

</mosaic_0001>

<bundles_post_ra>
// kernel: tpu_custom_call.1
= control target key start
LH: loop header
LB: loop body
LE: loop exit
PB: predicated region body
PF: predicated region fallthrough
CT: control target
= control target key end

     0   :  { %s4504_s0 = inlined_call_operand.hbm [shape: f32[16,128], index: 0, kind: input, shape index: {}]   ;;  %s4505_s1 = inlined_call_operand.hbm [shape: f32[8,8], index: 1, kind: input, shape index: {}]   ;;  %s4506_s2 = inlined_call_operand.vmem [shape: f32[2,1,128], index: 2, kind: input, shape index: {}]   ;;  %s4507_s3 = inlined_call_operand.vmem [shape: f32[2,1,128], index: 3, kind: input, shape index: {}]   ;;  %s4508_s4 = inlined_call_operand.hbm [shape: bf16[2,128,384], index: 4, kind: input, shape index: {}]   ;;  %s4509_s5 = inlined_call_operand.hbm [shape: bf16[2,32,128], index: 5, kind: input, shape index: {}]   ;;  %s4510_s6 = inlined_call_operand.vmem [shape: f32[2,1,128], index: 6, kind: input, shape index: {}]   ;;  %s4511_s7 = inlined_call_operand.vmem [shape: f32[2,1,128], index: 7, kind: input, shape index: {}]   ;;  %s4512_s8 = inlined_call_operand.vmem [shape: f32[2,1,128], index: 8, kind: input, shape index: {}]   ;;  %s4513_s9 = inlined_call_operand.hbm [shape: bf16[2,128,128], index: 9, kind: input, shape index: {}]   ;;  %s4514_s10 = inlined_call_operand.vmem [shape: f32[2,1,128], index: 10, kind: input, shape index: {}]   ;;  %s4515_s11 = inlined_call_operand.hbm [shape: bf16[2,128,128], index: 11, kind: input, shape index: {}]   ;;  %s4516_s12 = inlined_call_operand.vmem [shape: f32[2,1,128], index: 12, kind: input, shape index: {}]   ;;  %s4517_s13 = inlined_call_operand.vmem [shape: f32[1,128], index: 13, kind: input, shape index: {}]   ;;  %s4518_s14 = inlined_call_operand.vmem [shape: f32[1,128], index: 14, kind: input, shape index: {}]   ;;  %s4519_s15 = inlined_call_operand.hbm [shape: bf16[128,128], index: 15, kind: input, shape index: {}]   ;;  %s4520_s16 = inlined_call_operand.vmem [shape: f32[1,128], index: 16, kind: input, shape index: {}]   ;;  %s4521_s17 = inlined_call_operand.hbm [shape: f32[16,128], index: 17, kind: output, shape index: {}]  }
   0x1   :  { %4540 = sst [smem:[#allocation24_spill]] %s4504_s0 }
   0x2   :  { %4541 = sst [smem:[#allocation25_spill]] %s4505_s1 }
   0x3   :  { %4542 = sst [smem:[#allocation26_spill]] %s4506_s2 }
   0x4   :  { %4543 = sst [smem:[#allocation27_spill]] %s4507_s3 }
   0x5   :  { %4544 = sst [smem:[#allocation28_spill]] %s4508_s4 }
   0x6   :  { %4545 = sst [smem:[#allocation29_spill]] %s4509_s5 }
   0x7   :  { %4546 = sst [smem:[#allocation30_spill]] %s4510_s6 }
   0x8   :  { %4547 = sst [smem:[#allocation31_spill]] %s4511_s7 }
   0x9   :  { %4548 = sst [smem:[#allocation32_spill]] %s4512_s8 }
   0xa   :  { %4549 = sst [smem:[#allocation33_spill]] %s4513_s9 }
   0xb   :  { %4550 = sst [smem:[#allocation34_spill]] %s4514_s10 }
   0xc   :  { %4551 = sst [smem:[#allocation35_spill]] %s4515_s11 }
   0xd   :  { %4552 = sst [smem:[#allocation36_spill]] %s4516_s12 }
   0xe   :  { %4553 = sst [smem:[#allocation37_spill]] %s4517_s13 }
   0xf   :  { %4554 = sst [smem:[#allocation38_spill]] %s4518_s14 }
  0x10   :  { %4555 = sst [smem:[#allocation39_spill]] %s4519_s15 }
  0x11   :  { %4556 = sst [smem:[#allocation40_spill]] %s4520_s16 }
  0x12   :  { %4557 = sst [smem:[#allocation41_spill]] %s4521_s17 }
  0x13   :  { %22 = vsyncpa [#allocation4], 0 }
  0x14   :  { %23 = vsyncpa [#allocation7], 0 }
  0x15   :  { %24 = vsyncpa [#allocation5], 0  ;;  %s3806_s24 = smov 0   ;;  %s3808_s25 = smov 0  }
  0x16   :  { %s3810_s26 = smov 0   ;;  %s3812_s27 = smov 0  }
  0x17   :  { %s3814_s28 = smov 0   ;;  %s3816_s29 = smov 0  }
  0x18 LB: > { %4558 = sst [smem:[#allocation19_spill]] %s3676_s26  ;;  %s3835_s0 = sadd.s32 4294967295, %s3688_s29   ;;  %s3688_s29 = sphi %s3816_s29, %s30_s29   ;;  %s3684_s28 = sphi %s3814_s28, %s4619_s28   ;;  %s3680_s27 = sphi %s3812_s27, %s4618_s27   ;;  %s3676_s26 = sphi %s3810_s26, %s4614_s26   ;;  %s3672_s25 = sphi %s3808_s25, %s4617_s25   ;;  %s3668_s24 = sphi %s3806_s24, %s4616_s24  }
  0x19   : > { %4559 = sst [smem:[#allocation20_spill]] %s3680_s27  ;;  %p155_p0 = scmp.ne.s32.totalorder %s3676_s26, %s3672_s25 }
  0x1a   : > { %4560 = sst [smem:[#allocation21_spill]] %s3688_s29  ;;  %p156_p1 = scmp.eq.s32.totalorder %s3688_s29, 0 }
  0x1b   : > { %p161_p2 = scmp.ne.s32.totalorder %s3672_s25, %s3668_s24  ;;  %p4525_p3 = scmp.eq.s32.totalorder %s3835_s0, 0 }
  0x1c   : > { %p157_p4 = por %p156_p1, %p155_p0  ;;  %p2781_p5 = scmp.ge.s32.totalorder %s3688_s29, 1 }
  0x1d   : > { %p3846_p6 = por %p4525_p3, %p161_p2  ;;  %p490_p7 = scmp.lt.s32.totalorder %s3688_s29, 3 }
  0x1e   : > { %s3690_s1 = smov [#allocation3]   ;;  %p3197_p10 = scmp.lt.s32.totalorder %s3688_s29, 2 }
  0x1f   : > { %s4561_s18 = scalar_select %p3846_p6, 1, 0 }
  0x20   : > { %p3851_p8 = pnand %p2781_p5, %p490_p7  ;;  %s505_s20 = sshll.u32 %s3690_s1, 4  ;;  %s506_s20 = int_to_ptr.vmem [resolvable:$true] %s505_s20 }
  0x21   : > { %p3864_p12 = pnand %p3197_p10, %p157_p4  ;;  %s39_s23 = sadd.s32 1, %s3684_s28 }
  0x22   : > { %s4562_s19 = scalar_select %p3851_p8, 1, 0 }
  0x23   : > { %p3171_p9 = pneg %p3851_p8  ;;  %s4565_s17 = sld [smem:[#allocation24_spill]] }
  0x24   : > { %s4564_s22 = scalar_select %p3864_p12, 1, 0 }
  0x25   : > { %p3860_p11 = pnand %p3171_p9, %p4525_p3 }
  0x27   : > { %s4563_s21 = scalar_select %p3860_p11, 1, 0 }
  0x28   : > { %p3877_p0 = pneg %p3860_p11 }
  0x29   : > { %s3392_s16 = scalar_lea.hbm %s4565_s17, 256 }
  0x2a   : > { %p3393_p13 = scmp.ne.s32.totalorder %s4565_s17, %s3392_s16  ;;  %p3399_p4 = scmp.lt.u32.totalorder %s3392_s16, %s4565_s17 }
  0x2b   : > { %s4566_s13 = scalar_select %p3877_p0, 1, 0 }
  0x2c   : > { %p3395_p1 = pnand %p3877_p0, %p3393_p13 }
  0x2e   : > { %p3396_p2 = pneg %p3395_p1 }
  0x30   : > { %p3401_p5 = pnand %p3399_p4, %p3396_p2 }
  0x32   : > { %3404 = shalt.err (!%p3401_p5)
}
  0x33   : > { %s3405_s30 = scalar_lea.vmem %s506_s20, 256  ;;  %p3413_p3 = scmp.lt.s32.totalorder %s506_s20, %s506_s20 }
  0x34   : > { %p3406_p7 = scmp.ne.s32.totalorder %s506_s20, %s3405_s30  ;;  %p3414_p6 = scmp.lt.s32.totalorder %s3405_s30, %s3405_s30 }
  0x36   : > { %p3408_p9 = pnand %p3406_p7, %p3877_p0  ;;  %p3415_p8 = por %p3414_p6, %p3413_p3 }
  0x38   : > { %p3409_p10 = pneg %p3408_p9 }
  0x3a   : > { %p3416_p12 = pnand %p3415_p8, %p3409_p10 }
  0x3c   : > { %3419 = shalt.err (!%p3416_p12)
}
  0x3d   : > { %s3691_s14 = smov 128   ;;  %s3692_s10 = smov 8  }
  0x3e   : > { %3174 = dma.hbm_to_vmem [thread:$0]  (!%p3860_p11), %s4565_s17, 256, %s506_s20, [#allocation4], %s3691_s14, %s3691_s14, %s3692_s10  }
  0x3f   : > { %p40_p13 = scmp.ge.s32.totalorder %s39_s23, 2  ;;  %s564_s24 = sand.u32 1, %s3688_s29  }
  0x40   : > { %s3895_s1 = sand.u32 1, %s3676_s26   ;;  %s3145_s7 = smul.u32 3072, %s3684_s28 }
  0x41   : > { %s4621_s23 = smov (%p40_p13, %s39_s23), 0  ;;  %s3144_s30 = smul.u32 192, %s3895_s1 }
  0x42   : > { %4567 = sst [smem:[#allocation22_spill]] %s4621_s23  ;;  %s145_s8 = ssub.s32 %s3684_s28, %s4621_s23 }
  0x43   : > { %p146_p3 = scmp.eq.s32.totalorder %s145_s8, 0  ;;  %s4568_s4 = sld [smem:[#allocation28_spill]] }
  0x44   : > { %s568_s20 = scalar_lea.vmem [#allocation8], %s3144_s30  ;;  %s4569_s10 = sadd.s32 1, %s3676_s26 }
  0x45   : > { %s575_s14 = sshll.u32 %s568_s20, 4  ;;  %s3915_s16 = scalar_lea.sflag [#allocation4], %s564_s24  ;;  %s3913_s14 = int_to_ptr.vmem [resolvable:$true] %s575_s14 }
  0x46   : > { %s3911_s12 = scalar_select %p146_p3, %s3676_s26, %s4569_s10  }
  0x47   : > { %p4571_p8 = scmp.ne.s32.totalorder %s4564_s22, 0 }
  0x48   : > { %4570 = sst [smem:[#allocation23_spill]] %s3911_s12 }
  0x49   : > { %s3906_s2 = scalar_lea.hbm %s4568_s4, %s3145_s7  ;;  %p3921_p12 = pneg %p4571_p8 }
  0x4a   : > { %s3420_s17 = scalar_lea.hbm %s3906_s2, 3072  ;;  %s3425_s8 = scalar_lea.hbm %s4568_s4, 6144 }
  0x4b   : > { %p3421_p6 = scmp.ne.s32.totalorder %s3906_s2, %s3420_s17  ;;  %p3426_p4 = scmp.lt.u32.totalorder %s3906_s2, %s4568_s4 }
  0x4c   : > { %p3427_p5 = scmp.lt.u32.totalorder %s3425_s8, %s3420_s17  ;;  %p3429_p9 = scmp.lt.u32.totalorder %s3420_s17, %s3906_s2 }
  0x4d   : > { %p3423_p1 = pnand %p3921_p12, %p3421_p6 }
  0x4e   : > { %p3428_p7 = por %p3427_p5, %p3426_p4 }
  0x4f   : > { %p3424_p2 = pneg %p3423_p1 }
  0x50   : > { %p3430_p10 = por %p3429_p9, %p3428_p7 }
  0x52   : > { %p3431_p13 = pnand %p3430_p10, %p3424_p2 }
  0x54   : > { %3434 = shalt.err (!%p3431_p13)
}
  0x55   : > { %s3435_s24 = scalar_lea.vmem %s3913_s14, 3072  ;;  %s3693_s10 = smov [#allocation8]  }
  0x56   : > { %p3436_p3 = scmp.ne.s32.totalorder %s3913_s14, %s3435_s24  ;;  %s3440_s6 = sshll.u32 %s3693_s10, 4  ;;  %s3441_s6 = int_to_ptr.vmem [resolvable:$false] %s3440_s6 }
  0x57   : > { %s3442_s7 = scalar_lea.vmem %s3441_s6, 6144  ;;  %p3443_p11 = scmp.lt.s32.totalorder %s3913_s14, %s3441_s6 }
  0x58   : > { %p3438_p6 = pnand %p3436_p3, %p3921_p12  ;;  %p3444_p0 = scmp.lt.s32.totalorder %s3442_s7, %s3435_s24 }
  0x5a   : > { %p3439_p1 = pneg %p3438_p6  ;;  %p3445_p4 = por %p3444_p0, %p3443_p11 }
  0x5c   : > { %p3446_p5 = pnand %p3445_p4, %p3439_p1 }
  0x5e   : > { %3449 = shalt.err (!%p3446_p5)
}
  0x5f   : > { %s3694_s17 = smov 192   ;;  %s3695_s8 = smov 12  }
  0x60   : > { %3184 = dma.hbm_to_vmem [thread:$0]  (!%p4571_p8), %s3906_s2, 3072, %s3913_s14, %s3915_s16, %s3694_s17, %s3694_s17, %s3695_s8  }
  0x61   : > { %s2787_s30 = sshll.u32 %s3895_s1, 4  ;;  %s2886_s20 = sshll.u32 %s3684_s28, 8 }
  0x62   : > { %s4573_s5 = sld [smem:[#allocation29_spill]]  ;;  %s589_s6 = scalar_lea.vmem [#allocation9], %s2787_s30 }
  0x63   : > { %s596_s7 = sshll.u32 %s589_s6, 4  ;;  %s3952_s7 = int_to_ptr.vmem [resolvable:$true] %s596_s7 }
  0x68   : > { %s3950_s24 = scalar_lea.hbm %s4573_s5, %s2886_s20  ;;  %s3455_s17 = scalar_lea.hbm %s4573_s5, 512 }
  0x69   : > { %s3450_s23 = scalar_lea.hbm %s3950_s24, 256  ;;  %p3456_p7 = scmp.lt.u32.totalorder %s3950_s24, %s4573_s5 }
  0x6a   : > { %p3451_p11 = scmp.ne.s32.totalorder %s3950_s24, %s3450_s23  ;;  %p3457_p9 = scmp.lt.u32.totalorder %s3455_s17, %s3450_s23 }
  0x6b   : > { %p3459_p13 = scmp.lt.u32.totalorder %s3450_s23, %s3950_s24 }
  0x6c   : > { %p3453_p0 = pnand %p3451_p11, %p3921_p12  ;;  %p3458_p10 = por %p3457_p9, %p3456_p7 }
  0x6e   : > { %p3454_p2 = pneg %p3453_p0  ;;  %p3460_p3 = por %p3459_p13, %p3458_p10 }
  0x70   : > { %p3461_p6 = pnand %p3460_p3, %p3454_p2 }
  0x72   : > { %3464 = shalt.err (!%p3461_p6)
}
  0x73   : > { %s3465_s30 = scalar_lea.vmem %s3952_s7, 256  ;;  %s3696_s20 = smov [#allocation9]  }
  0x74   : > { %p3466_p1 = scmp.ne.s32.totalorder %s3952_s7, %s3465_s30  ;;  %s3470_s10 = sshll.u32 %s3696_s20, 4  ;;  %s3471_s10 = int_to_ptr.vmem [resolvable:$false] %s3470_s10 }
  0x75   : > { %s3472_s6 = scalar_lea.vmem %s3471_s10, 512  ;;  %p3473_p11 = scmp.lt.s32.totalorder %s3952_s7, %s3471_s10 }
  0x76   : > { %p3468_p4 = pnand %p3466_p1, %p3921_p12  ;;  %p3474_p0 = scmp.lt.s32.totalorder %s3472_s6, %s3465_s30 }
  0x78   : > { %p3469_p5 = pneg %p3468_p4  ;;  %p3475_p7 = por %p3474_p0, %p3473_p11 }
  0x7a   : > { %p3476_p9 = pnand %p3475_p7, %p3469_p5 }
  0x7c   : > { %3479 = shalt.err (!%p3476_p9)
}
  0x7d   : > { %s3697_s23 = smov 64   ;;  %s3698_s2 = smov 4  }
  0x7e   : > { %3187 = dma.hbm_to_vmem [thread:$0]  (!%p4571_p8), %s3950_s24, 256, %s3952_s7, %s3915_s16, %s3697_s23, %s3697_s23, %s3698_s2  }
  0x7f   : > { %s3699_s14 = smov [#allocation6]   ;;  %s2790_s4 = sshll.u32 %s3895_s1, 6 }
  0x80   : > { %s519_s17 = sshll.u32 %s3699_s14, 4  ;;  %s4574_s20 = sld [smem:[#allocation25_spill]]  ;;  %s520_s17 = int_to_ptr.vmem [resolvable:$true] %s519_s17 }
  0x81   : > { %p4575_p10 = scmp.ne.s32.totalorder %s4566_s13, 0 }
  0x86   : > { %s3480_s10 = scalar_lea.hbm %s4574_s20, 128 }
  0x87   : > { %p3481_p2 = scmp.ne.s32.totalorder %s4574_s20, %s3480_s10  ;;  %p3487_p6 = scmp.lt.u32.totalorder %s3480_s10, %s4574_s20 }
  0x89   : > { %p3483_p13 = pnand %p3481_p2, %p4575_p10 }
  0x8b   : > { %p3484_p3 = pneg %p3483_p13 }
  0x8d   : > { %p3489_p1 = pnand %p3487_p6, %p3484_p3 }
  0x8f   : > { %3492 = shalt.err (!%p3489_p1)
}
  0x90   : > { %s3493_s24 = scalar_lea.vmem %s520_s17, 128  ;;  %p3501_p0 = scmp.lt.s32.totalorder %s520_s17, %s520_s17 }
  0x91   : > { %p3494_p4 = scmp.ne.s32.totalorder %s520_s17, %s3493_s24  ;;  %p3502_p7 = scmp.lt.s32.totalorder %s3493_s24, %s3493_s24 }
  0x93   : > { %p3496_p5 = pnand %p3494_p4, %p4575_p10  ;;  %p3503_p9 = por %p3502_p7, %p3501_p0 }
  0x95   : > { %p3497_p11 = pneg %p3496_p5 }
  0x97   : > { %p3504_p8 = pnand %p3503_p9, %p3497_p11 }
  0x99   : > { %3507 = shalt.err (!%p3504_p8)
}
  0x9a   : > { %p4576_p2 = scmp.ne.s32.totalorder %s4563_s21, 0  ;;  %s2887_s26 = sshll.u32 %s3684_s28, 10 }
  0x9b   : > { %s628_s12 = scalar_lea.vmem [#allocation10], %s2790_s4  ;;  %s4577_s9 = sld [smem:[#allocation33_spill]] }
  0x9c   : > { %3177 = dma.hbm_to_vmem [thread:$0]  (!%p4576_p2), %s4574_s20, 128, %s520_s17, [#allocation7]  }
  0x9d   : > { %s635_s14 = sshll.u32 %s628_s12, 4  ;;  %s4008_s14 = int_to_ptr.vmem [resolvable:$true] %s635_s14 }
  0xa1   : > { %s4006_s10 = scalar_lea.hbm %s4577_s9, %s2887_s26  ;;  %s3513_s5 = scalar_lea.hbm %s4577_s9, 2048 }
  0xa2   : > { %s3508_s6 = scalar_lea.hbm %s4006_s10, 1024  ;;  %p3514_p6 = scmp.lt.u32.totalorder %s4006_s10, %s4577_s9 }
  0xa3   : > { %p3509_p8 = scmp.ne.s32.totalorder %s4006_s10, %s3508_s6  ;;  %p3515_p1 = scmp.lt.u32.totalorder %s3513_s5, %s3508_s6 }
  0xa4   : > { %p3517_p5 = scmp.lt.u32.totalorder %s3508_s6, %s4006_s10 }
  0xa5   : > { %p3511_p13 = pnand %p3509_p8, %p3921_p12  ;;  %p3516_p4 = por %p3515_p1, %p3514_p6 }
  0xa7   : > { %p3512_p3 = pneg %p3511_p13  ;;  %p3518_p11 = por %p3517_p5, %p3516_p4 }
  0xa9   : > { %p3519_p0 = pnand %p3518_p11, %p3512_p3 }
  0xab   : > { %3522 = shalt.err (!%p3519_p0)
}
  0xac   : > { %s3523_s8 = scalar_lea.vmem %s4008_s14, 1024  ;;  %s3700_s30 = smov [#allocation10]  }
  0xad   : > { %p3524_p7 = scmp.ne.s32.totalorder %s4008_s14, %s3523_s8  ;;  %s3528_s17 = sshll.u32 %s3700_s30, 4  ;;  %s3529_s17 = int_to_ptr.vmem [resolvable:$false] %s3528_s17 }
  0xae   : > { %s3530_s24 = scalar_lea.vmem %s3529_s17, 2048  ;;  %p3531_p13 = scmp.lt.s32.totalorder %s4008_s14, %s3529_s17 }
  0xaf   : > { %p3526_p9 = pnand %p3524_p7, %p3921_p12  ;;  %p3532_p2 = scmp.lt.s32.totalorder %s3530_s24, %s3523_s8 }
  0xb1   : > { %p3527_p8 = pneg %p3526_p9  ;;  %p3533_p6 = por %p3532_p2, %p3531_p13 }
  0xb3   : > { %p3534_p1 = pnand %p3533_p6, %p3527_p8 }
  0xb5   : > { %3537 = shalt.err (!%p3534_p1)
}
  0xb6   : > { %p4578_p3 = scmp.ne.s32.totalorder %s4564_s22, 0  ;;  %s3701_s6 = smov [#allocation12]  }
  0xb7   : > { %s535_s5 = sshll.u32 %s3701_s6, 4  ;;  %s4579_s11 = sld [smem:[#allocation35_spill]]  ;;  %s536_s5 = int_to_ptr.vmem [resolvable:$true] %s535_s5 }
  0xb8   : > { %3190 = dma.hbm_to_vmem [thread:$0]  (!%p4578_p3), %s4006_s10, 1024, %s4008_s14, %s3915_s16, %s3697_s23, %s3697_s23, %s3698_s2  }
  0xb9   : > { %s655_s30 = scalar_lea.vmem [#allocation11], %s2790_s4  ;;  %s4580_s15 = sld [smem:[#allocation39_spill]] }
  0xba   : > { %s662_s17 = sshll.u32 %s655_s30, 4  ;;  %s4065_s17 = int_to_ptr.vmem [resolvable:$true] %s662_s17 }
  0xbd   : > { %s4040_s8 = scalar_lea.hbm %s4579_s11, %s2887_s26 }
  0xbf   : > { %s3538_s20 = scalar_lea.hbm %s4580_s15, 1024 }
  0xc0   : > { %p3539_p2 = scmp.ne.s32.totalorder %s4580_s15, %s3538_s20  ;;  %p3545_p11 = scmp.lt.u32.totalorder %s3538_s20, %s4580_s15 }
  0xc2   : > { %p3541_p4 = pnand %p3539_p2, %p4575_p10 }
  0xc4   : > { %p3542_p5 = pneg %p3541_p4 }
  0xc6   : > { %p3547_p0 = pnand %p3545_p11, %p3542_p5 }
  0xc8   : > { %3550 = shalt.err (!%p3547_p0)
}
  0xc9   : > { %s3551_s1 = scalar_lea.vmem %s536_s5, 1024  ;;  %p3559_p13 = scmp.lt.s32.totalorder %s536_s5, %s536_s5 }
  0xca   : > { %p3552_p7 = scmp.ne.s32.totalorder %s536_s5, %s3551_s1  ;;  %p3560_p6 = scmp.lt.s32.totalorder %s3551_s1, %s3551_s1 }
  0xcc   : > { %p3554_p9 = pnand %p3552_p7, %p4575_p10  ;;  %p3561_p1 = por %p3560_p6, %p3559_p13 }
  0xce   : > { %p3555_p8 = pneg %p3554_p9 }
  0xd0   : > { %p3562_p3 = pnand %p3561_p1, %p3555_p8 }
  0xd2   : > { %3565 = shalt.err (!%p3562_p3)
}
  0xd3   : > { %p4581_p2 = scmp.ne.s32.totalorder %s4563_s21, 0  ;;  %s3566_s13 = scalar_lea.hbm %s4040_s8, 1024 }
  0xd4   : > { %p3567_p10 = scmp.ne.s32.totalorder %s4040_s8, %s3566_s13  ;;  %s3571_s4 = scalar_lea.hbm %s4579_s11, 2048 }
  0xd5   : > { %3180 = dma.hbm_to_vmem [thread:$0]  (!%p4581_p2), %s4580_s15, 1024, %s536_s5, [#allocation7], %s3697_s23, %s3697_s23, %s3698_s2  }
  0xd6   : > { %p3569_p3 = pnand %p3567_p10, %p3921_p12  ;;  %p3572_p5 = scmp.lt.u32.totalorder %s4040_s8, %s4579_s11 }
  0xd7   : > { %p3573_p11 = scmp.lt.u32.totalorder %s3571_s4, %s3566_s13  ;;  %p3575_p7 = scmp.lt.u32.totalorder %s3566_s13, %s4040_s8 }
  0xd8   : > { %p3570_p4 = pneg %p3569_p3 }
  0xd9   : > { %p3574_p0 = por %p3573_p11, %p3572_p5 }
  0xdb   : > { %p3576_p9 = por %p3575_p7, %p3574_p0 }
  0xdd   : > { %p3577_p8 = pnand %p3576_p9, %p3570_p4 }
  0xdf   : > { %3580 = shalt.err (!%p3577_p8)
}
  0xe0   : > { %s3581_s6 = scalar_lea.vmem %s4065_s17, 1024  ;;  %s3702_s5 = smov [#allocation11]  }
  0xe1   : > { %p3582_p13 = scmp.ne.s32.totalorder %s4065_s17, %s3581_s6  ;;  %s3586_s7 = sshll.u32 %s3702_s5, 4  ;;  %s3587_s7 = int_to_ptr.vmem [resolvable:$false] %s3586_s7 }
  0xe2   : > { %s3588_s12 = scalar_lea.vmem %s3587_s7, 2048  ;;  %p3589_p2 = scmp.lt.s32.totalorder %s4065_s17, %s3587_s7 }
  0xe3   : > { %p3584_p6 = pnand %p3582_p13, %p3921_p12  ;;  %p3590_p10 = scmp.lt.s32.totalorder %s3588_s12, %s3581_s6 }
  0xe5   : > { %p3585_p1 = pneg %p3584_p6  ;;  %p3591_p3 = por %p3590_p10, %p3589_p2 }
  0xe7   : > { %p3592_p5 = pnand %p3591_p3, %p3585_p1 }
  0xe9   : > { %3595 = shalt.err (!%p3592_p5)
}
  0xea   : > { %p4582_p4 = scmp.ne.s32.totalorder %s4564_s22, 0  ;;  %p4583_p12 = scmp.ne.s32.totalorder %s4562_s19, 0 }
  0xeb   : > { %p4584_p11 = scmp.eq.s32.totalorder (!%p4583_p12), %s3835_s0, 0 }
  0xec   : > { %3193 = dma.hbm_to_vmem [thread:$0]  (!%p4582_p4), %s4040_s8, 1024, %s4065_s17, %s3915_s16, %s3697_s23, %s3697_s23, %s3698_s2  }
  0xed   : > { %680 = sbr.rel (%p4583_p12) target bundleno = 2997 (0xbb5), region = 88 }
  0xf4   : > { %3647 = dma.done.wait (%p4584_p11), [#allocation4], 256   ;;  %p4585_p0 = pmov %p4584_p11 }
  0xf6   : > { %3649 = vsyncadd (%p4585_p0), [#allocation4], 4294967040  ;;  %p4586_p7 = pmov %p4585_p0 }
  0xf7   : > { %p4587_p9 = pmov %p4585_p0 }
  0xf8   : > { %3651 = dma.done.wait (%p4586_p7), [#allocation7], 128  }
  0xf9   : > { %3653 = vsyncadd (%p4587_p9), [#allocation7], 4294967168  ;;  %s690_s22 = sand.u32 1, %s3835_s0   ;;  %s692_s16 = sand.u32 1, %s3672_s25  }
  0xfa   : > { %s3146_s3 = smul.u32 192, %s692_s16  ;;  %s691_s19 = scalar_lea.sflag [#allocation4], %s690_s22 }
  0xfb   : > { %p4588_p8 = scmp.ne.s32.totalorder %s4561_s18, 0 }
  0xfc   : > { %s4104_s23 = scalar_lea.vmem [#allocation8], %s3146_s3 }
  0xfd   : > { %3655 = dma.done.wait (%p4588_p8), %s691_s19, 5376  }
  0xfe   : > { %3657 = vsyncadd (%p4588_p8), %s691_s19, 4294961920  ;;  %s2799_s2 = sshll.u32 %s692_s16, 4  ;;  %s2800_s8 = sshll.u32 %s692_s16, 6 }
  0xff   : > { %s4110_s30 = scalar_lea.vmem [#allocation9], %s2799_s2  ;;  %s4112_s17 = scalar_lea.vmem [#allocation10], %s2800_s8 }
 0x100   : > { %s4114_s24 = scalar_lea.vmem [#allocation11], %s2800_s8  ;;  %p4589_p13 = pmov %p4585_p0 }
 0x101   : > { %p4590_p6 = pmov %p4585_p0 }
 0x102   : > { %3659 = dma.done.wait (%p4589_p13), [#allocation7], 1024  }
 0x103   : > { %3661 = vsyncadd (%p4590_p6), [#allocation7], 4294966272  ;;  %s4591_s14 = sld [smem:[#allocation20_spill]]  ;;  %s4593_s21 = sld [smem:[#allocation27_spill]] }
 0x104   : > { %s4594_s6 = sld [smem:[#allocation30_spill]]  ;;  %s4595_s22 = sld [smem:[#allocation31_spill]] }
 0x105   : > { %s4596_s2 = sld [smem:[#allocation32_spill]]  ;;  %s4597_s11 = sld [smem:[#allocation34_spill]] }
 0x106   : > { %s4598_s13 = sld [smem:[#allocation36_spill]] }
 0x109   : > { %p808_p1 = scmp.lt.s32.totalorder %s4591_s14, 1  ;;  %p2803_p2 = scmp.ne.s32.totalorder %s4591_s14, 0 }
 0x10a   : > { %v835_v0 = vld [vmem:[#allocation3] sm:$0xff] (!%p2803_p2)  ;;  %v836_v1 = vld [vmem:[#allocation3 + $0x8] sm:$0xff] (!%p2803_p2) }
 0x10b   : > { %s4122_s10 = scalar_select %p808_p1, %s4591_s14, 1 }
 0x10c   : > { %834 = sbr.rel (%p2803_p2) target bundleno = 275 (0x113), region = 120  ;;  %837 = vst [vmem:[#allocation2] sm:$0xff] (!%p2803_p2), %v835_v0  ;;  %838 = vst [vmem:[#allocation2 + $0x8] sm:$0xff] (!%p2803_p2), %v836_v1 }
 0x10d   : > { %s813_s4 = scalar_lea.vmem %s4593_s21, %s4122_s10  ;;  %s816_s5 = scalar_lea.vmem %s4594_s6, %s4122_s10 }
 0x10e   : > { %s819_s16 = scalar_lea.vmem %s4595_s22, %s4122_s10  ;;  %s822_s8 = scalar_lea.vmem %s4596_s2, %s4122_s10 }
 0x10f   : > { %s825_s9 = scalar_lea.vmem %s4597_s11, %s4122_s10  ;;  %s828_s29 = scalar_lea.vmem %s4598_s13, %s4122_s10 }
 0x113 PF: > { %v4153_v2 = vld [vmem:[#allocation2] sm:$0xff]  ;;  %v4155_v3 = vld [vmem:[#allocation2 + $0x8] sm:$0xff]  ;;  %v3703_v6 = vmov 0.0   ;;  %v3291_v9 = vld [vmem:[%s4104_s23 + $0x8] ss:$12 sps:$4 sm:$0xff]   ;;  %v3704_v26 = vmov 0  }
 0x114   : > { %843 = vadd.xlane.f32.xlu0 %v4153_v2  ;;  %v849_v4 = vmul.f32 %v4153_v2, %v4153_v2  ;;  %v3288_v5 = vld [vmem:[%s4104_s23 + $0x4] ss:$12 sps:$4 sm:$0xff]   ;;  %2960 = vmatprep.subr.bf16.mxu1 %v3703_v6  ;;  %v850_v7 = vmul.f32 %v4155_v3, %v4155_v3  ;;  %v3290_v8 = vld [vmem:[%s4104_s23] ss:$12 sps:$4 sm:$0xff]   ;;  %v3292_v10 = vld [vmem:[%s4104_s23 + $0x1c] ss:$12 sps:$4 sm:$0xff]  }
 0x115   : > { %1046 = vmatprep.subr.bf16.mxu0 %v3288_v5  ;;  %2961 = vmatpush3.bf16.msra.mxu1 %v3291_v9  ;;  %v3294_v11 = vld [vmem:[%s4104_s23 + $0x18] ss:$12 sps:$4 sm:$0xff]   ;;  %v3295_v12 = vld [vmem:[%s4104_s23 + $0x20] ss:$12 sps:$4 sm:$0xff]   ;;  %v3298_v14 = vld [vmem:[%s4104_s23 + $0x30] ss:$12 sps:$4 sm:$0xff]  }
 0x116   : > { %851 = vadd.xlane.f32.xlu1 %v849_v4  ;;  %1047 = vmatpush1.bf16.msra.mxu0 %v3290_v8  ;;  %v3296_v13 = vld [vmem:[%s4104_s23 + $0x34] ss:$12 sps:$4 sm:$0xff]   ;;  %v3299_v15 = vld [vmem:[%s4104_s23 + $0x38] ss:$12 sps:$4 sm:$0xff]   ;;  %v3303_v18 = vld [vmem:[%s4104_s23 + $0x50] ss:$12 sps:$4 sm:$0xff]  }
 0x117   : > { %2962 = vmatprep.subr.bf16.mxu1 %v3703_v6  ;;  %1048 = vmatprep.subr.bf16.mxu0 %v3292_v10  ;;  %v3300_v16 = vld [vmem:[%s4104_s23 + $0x4c] ss:$12 sps:$4 sm:$0xff]   ;;  %v3302_v17 = vld [vmem:[%s4104_s23 + $0x48] ss:$12 sps:$4 sm:$0xff]   ;;  %v3304_v19 = vld [vmem:[%s4104_s23 + $0x64] ss:$12 sps:$4 sm:$0xff]  }
 0x118   : > { %845 = vadd.xlane.f32.xlu0 %v4155_v3  ;;  %v3306_v20 = vld [vmem:[%s4104_s23 + $0x60] ss:$12 sps:$4 sm:$0xff]   ;;  %v3307_v21 = vld [vmem:[%s4104_s23 + $0x68] ss:$12 sps:$4 sm:$0xff]   ;;  %v3310_v23 = vld [vmem:[%s4104_s23 + $0x78] ss:$12 sps:$4 sm:$0xff]   ;;  %1078 = vmatprep.mubr.bf16.mxu0 %v3704_v26 }
 0x119   : > { %2963 = vmatpush3.bf16.msra.mxu1 %v3295_v12  ;;  %v3308_v22 = vld [vmem:[%s4104_s23 + $0x7c] ss:$12 sps:$4 sm:$0xff]   ;;  %v3311_v24 = vld [vmem:[%s4104_s23 + $0x80] ss:$12 sps:$4 sm:$0xff]   ;;  %vm3705_vm0 = vmmov 0   ;;  %vm1198_vm1 = vcmask 1043456  }
 0x11a   : > { %853 = vadd.xlane.f32.xlu1 %v850_v7  ;;  %1049 = vmatpush1.bf16.msra.mxu0 %v3294_v11  ;;  %v3312_v25 = vld [vmem:[%s4104_s23 + $0x94] ss:$12 sps:$4 sm:$0xff]   ;;  %v3314_v27 = vld [vmem:[%s4104_s23 + $0x90] ss:$12 sps:$4 sm:$0xff]   ;;  %v3315_v28 = vld [vmem:[%s4104_s23 + $0x98] ss:$12 sps:$4 sm:$0xff]  }
 0x11b   : > { %2964 = vmatprep.subr.bf16.mxu1 %v3703_v6  ;;  %1050 = vmatprep.subr.bf16.mxu0 %v3296_v13  ;;  %v3316_v29 = vld [vmem:[%s4104_s23 + $0xac] ss:$12 sps:$4 sm:$0xff]   ;;  %v3318_v30 = vld [vmem:[%s4104_s23 + $0xa8] ss:$12 sps:$4 sm:$0xff]   ;;  %v3319_v31 = vld [vmem:[%s4104_s23 + $0xb0] ss:$12 sps:$4 sm:$0xff]  }
 0x11c   : > { %2976 = vmatprep.mubr.msk.bf16.mxu1 %vm3705_vm0, %v3703_v6  ;;  %s4599_s23 = sld [smem:[#allocation26_spill]]  ;;  %v2805_v54 = vld [vmem:[%s813_s4] ss:$0 sm:$0xff]  ;;  %vm1136_vm2 = vcmask 64512   ;;  %s3706_s4 = smov 120   ;;  %vm1588_vm3 = vcmask 130048  }
 0x11d   : > { %2965 = vmatpush3.bf16.msra.mxu1 %v3299_v15  ;;  %s3707_s26 = smov 104   ;;  %s3708_s6 = smov 112   ;;  %vm1590_vm4 = vcmask 195584   ;;  %vm2068_vm5 = vcmask 261120  }
 0x11e   : > { %1051 = vmatpush1.bf16.msra.mxu0 %v3298_v14  ;;  %2966 = vmatprep.subr.bf16.mxu1 %v3703_v6  ;;  %s3709_s7 = smov 8   ;;  %s3710_s12 = smov 16  }
 0x11f   : > { %1052 = vmatprep.subr.bf16.mxu0 %v3300_v16  ;;  %s3711_s22 = smov 24  }
 0x121   : > { %2967 = vmatpush3.bf16.msra.mxu1 %v3303_v18 }
 0x122   : > { %1053 = vmatpush1.bf16.msra.mxu0 %v3302_v17  ;;  %2968 = vmatprep.subr.bf16.mxu1 %v3703_v6  ;;  %s4600_s14 = scalar_lea.vmem %s4599_s23, %s4122_s10 }
 0x123   : > { %1054 = vmatprep.subr.bf16.mxu0 %v3304_v19  ;;  %v2804_v49 = vld [vmem:[%s4600_s14] ss:$0 sm:$0xff] }
 0x125   : > { %2969 = vmatpush3.bf16.msra.mxu1 %v3307_v21 }
 0x126   : > { %1055 = vmatpush1.bf16.msra.mxu0 %v3306_v20  ;;  %2970 = vmatprep.subr.bf16.mxu1 %v3703_v6 }
 0x127   : > { %1056 = vmatprep.subr.bf16.mxu0 %v3308_v22 }
 0x129   : > { %2971 = vmatpush3.bf16.msra.mxu1 %v3311_v24 }
 0x12a   : > { %1057 = vmatpush1.bf16.msra.mxu0 %v3310_v23  ;;  %2972 = vmatprep.subr.bf16.mxu1 %v3703_v6 }
 0x12b   : > { %1058 = vmatprep.subr.bf16.mxu0 %v3312_v25 }
 0x12d   : > { %2973 = vmatpush3.bf16.msra.mxu1 %v3315_v28 }
 0x12e   : > { %1059 = vmatpush1.bf16.msra.mxu0 %v3314_v27  ;;  %2974 = vmatprep.subr.bf16.mxu1 %v3703_v6 }
 0x12f   : > { %1060 = vmatprep.subr.bf16.mxu0 %v3316_v29 }
 0x131   : > { %2975 = vmatpush3.bf16.msra.mxu1 %v3319_v31 }
 0x132   : > { %1061 = vmatpush1.bf16.msra.mxu0 %v3318_v30  ;;  %2986 = vmatprep.subr.bf16.mxu1 %v3703_v6 }
 0x133   : > { %2980 = vmatprep.subr.bf16.mxu0 %v3703_v6 }
 0x1a1   : > { %v844_v32 = vpop.xlane.xlu0 %843 }
 0x1a2   : > { %v847_v33 = vmul.f32 0.03125, %v844_v32  ;;  %v1135_v32 = vld [vmem:[#allocation6] sm:$0xff] }
 0x1a3   : > { %v852_v34 = vpop.xlane.xlu1 %851 }
 0x1a4   : > { %v857_v35 = vmul.f32 %v847_v33, %v847_v33  ;;  %v855_v36 = vmul.f32 0.03125, %v852_v34  ;;  %v861_v46 = vsub.f32 %v4153_v2, %v847_v33 }
 0x1a5   : > { %v846_v37 = vpop.xlane.xlu0 %845 }
 0x1a6   : > { %v859_v38 = vsub.f32 %v855_v36, %v857_v35  ;;  %v848_v39 = vmul.f32 0.03125, %v846_v37 }
 0x1a7   : > { %v854_v40 = vpop.xlane.xlu1 %853 }
 0x1a8   : > { %v863_v41 = vadd.f32 1e-05, %v859_v38  ;;  %v858_v42 = vmul.f32 %v848_v39, %v848_v39  ;;  %v856_v43 = vmul.f32 0.03125, %v854_v40  ;;  %v862_v50 = vsub.f32 %v4155_v3, %v848_v39 }
 0x1aa   : > { %3338 = vrsqrt.f32 %v863_v41  ;;  %v860_v44 = vsub.f32 %v856_v43, %v858_v42 }
 0x1ac   : > { %v864_v45 = vadd.f32 1e-05, %v860_v44 }
 0x1ae   : > { %3340 = vrsqrt.f32 %v864_v45 }
 0x1b4   : > { %v3339_v47 = vpop.eup %3338 }
 0x1b5   : > { %v867_v48 = vmul.f32 %v3339_v47, %v861_v46 }
 0x1b7   : > { %v875_v53 = vmul.f32 %v2804_v49, %v867_v48 }
 0x1b8   : > { %v3341_v51 = vpop.eup %3340 }
 0x1b9   : > { %v868_v52 = vmul.f32 %v3341_v51, %v862_v50  ;;  %v883_v56 = vadd.f32 %v2805_v54, %v875_v53 }
 0x1bb   : > { %v876_v55 = vmul.f32 %v2804_v49, %v868_v52 }
 0x1bd   : > { %v884_v57 = vadd.f32 %v2805_v54, %v876_v55 }
 0x1bf   : > { %v885_v58 = vpack.c.bf16 %v884_v57, %v883_v56 }
 0x1c1   : > { %1079 = vmatmul.mubr.bf16.vlgmr.msra.gmra.mrb[0].mxu0 %v885_v58  ;;  %2977 = vmatmul.mubr.bf16.vlgmr.msra.gmra.mrb[0].mxu1 %v885_v58 }
 0x1c2   : > { %2982 = vmatprep.mubr.msk.bf16.mxu0 %vm3705_vm0, %v3703_v6  ;;  %2988 = vmatprep.mubr.msk.bf16.mxu1 %vm3705_vm0, %v3703_v6 }
 0x294   : > { %v1080_v59 = vpop.f32.mrb[0].mxu0  ;;  %v1123_v60 = vpop.f32.mrb[0].mxu1 }
 0x295   : > { %v1082_v61 = vpop.f32.mrb[1].mxu0  ;;  %v2978_v62 = vpop.f32.mrb[1].mxu1  ;;  %v1130_v1 = vmul.f32 0.35355338, %v1080_v59 }
 0x296   : > { %v1084_v63 = vpop.f32.mrb[2].mxu0  ;;  %v1126_v0 = vpop.f32.mrb[2].mxu1 }
 0x297   : > { %v1131_v2 = vmul.f32 0.35355338, %v1084_v63  ;;  %v4215_v3 = vpack.c.bf16 %v1126_v0, %v1123_v60  ;;  %v1086_v4 = vpop.f32.mrb[3].mxu0  ;;  %v2979_v5 = vpop.f32.mrb[3].mxu1 }
 0x298   : > { %v1133_v7 = vpack.c.bf16 %v1086_v4, %v1082_v61 }
 0x299   : > { %v1132_v8 = vpack.c.bf16 %v1131_v2, %v1130_v1  ;;  %v1200_v9 = vsel %vm1198_vm1, %v4215_v3, 0 }
 0x29a   : > { %2987 = vmatpush3.bf16.msra.mxu1 %v1200_v9  ;;  %1246 = vrot.lane.b32.xlu0 %v1133_v7, %s3706_s4  ;;  %v1141_v10 = vsel %vm1136_vm2, %v1133_v7, 0  ;;  %v1593_v11 = vrot.slane %v1133_v7, 4 }
 0x29b   : > { %1243 = vrot.lane.b32.xlu1 %v1132_v8, %s3706_s4  ;;  %2981 = vmatpush3.bf16.xpose.msra.mxu0 %v1141_v10  ;;  %v1592_v12 = vrot.slane %v1132_v8, 4 }
 0x29c   : > { %2992 = vmatprep.subr.bf16.mxu0 %v3703_v6  ;;  %2998 = vmatprep.subr.bf16.mxu1 %v3703_v6  ;;  %v1598_v22 = vsel %vm1136_vm2, %v1593_v11, 0 }
 0x29e   : > { %1467 = vrot.lane.b32.xlu0 %v1133_v7, %s3707_s26 }
 0x29f   : > { %1357 = vrot.lane.b32.xlu1 %v1133_v7, %s3708_s6 }
 0x2a2   : > { %1701 = vrot.lane.b32.xlu0 %v1593_v11, %s3706_s4  ;;  %2983 = vmatmul.mubr.msk.bf16.vlgmr.msra.gmra.mrb[4].mxu0 %vm1136_vm2, %v1132_v8 }
 0x2a3   : > { %1355 = vrot.lane.b32.xlu1 %v1132_v8, %s3708_s6  ;;  %2994 = vmatprep.mubr.msk.bf16.mxu0 %vm3705_vm0, %v3703_v6 }
 0x2a6   : > { %1811 = vrot.lane.b32.xlu0 %v1593_v11, %s3708_s6 }
 0x2a7   : > { %1465 = vrot.lane.b32.xlu1 %v1132_v8, %s3707_s26 }
 0x2aa   : > { %1921 = vrot.lane.b32.xlu0 %v1593_v11, %s3707_s26 }
 0x2ab   : > { %1699 = vrot.lane.b32.xlu1 %v1592_v12, %s3706_s4 }
 0x2af   : > { %1809 = vrot.lane.b32.xlu1 %v1592_v12, %s3708_s6 }
 0x2b3   : > { %1919 = vrot.lane.b32.xlu1 %v1592_v12, %s3707_s26 }
 0x30c   : > { %v1247_v13 = vpop.permute.xlu0 %1246 }
 0x30d   : > { %v1252_v14 = vsel %vm1136_vm2, %v1247_v13, 0  ;;  %v1244_v15 = vpop.permute.xlu1 %1243 }
 0x30e   : > { %2993 = vmatpush3.bf16.xpose.msra.mxu0 %v1252_v14 }
 0x30f   : > { %3004 = vmatprep.subr.bf16.mxu0 %v3703_v6 }
 0x310   : > { %v1468_v18 = vpop.permute.xlu0 %1467 }
 0x311   : > { %v1358_v16 = vpop.permute.xlu1 %1357  ;;  %v1473_v20 = vsel %vm1136_vm2, %v1468_v18, 0 }
 0x312   : > { %v1363_v17 = vsel %vm1136_vm2, %v1358_v16, 0 }
 0x314   : > { %v1702_v23 = vpop.permute.xlu0 %1701 }
 0x315   : > { %2995 = vmatmul.mubr.msk.bf16.vlgmr.msra.gmra.mrb[8].mxu0 %vm1136_vm2, %v1244_v15  ;;  %v1356_v19 = vpop.permute.xlu1 %1355  ;;  %v1707_v24 = vsel %vm1136_vm2, %v1702_v23, 0 }
 0x316   : > { %3005 = vmatpush3.bf16.xpose.msra.mxu0 %v1363_v17  ;;  %3006 = vmatprep.mubr.msk.bf16.mxu0 %vm3705_vm0, %v3703_v6 }
 0x317   : > { %3016 = vmatprep.subr.bf16.mxu0 %v3703_v6 }
 0x318   : > { %v1812_v25 = vpop.permute.xlu0 %1811 }
 0x319   : > { %v1466_v21 = vpop.permute.xlu1 %1465  ;;  %v1817_v27 = vsel %vm1136_vm2, %v1812_v25, 0 }
 0x31c   : > { %v1922_v28 = vpop.permute.xlu0 %1921 }
 0x31d   : > { %3007 = vmatmul.mubr.msk.bf16.vlgmr.msra.gmra.mrb[12].mxu0 %vm1136_vm2, %v1356_v19  ;;  %v1700_v26 = vpop.permute.xlu1 %1699  ;;  %v1927_v30 = vsel %vm1136_vm2, %v1922_v28, 0 }
 0x31e   : > { %3017 = vmatpush3.bf16.xpose.msra.mxu0 %v1473_v20  ;;  %3018 = vmatprep.mubr.msk.bf16.mxu0 %vm3705_vm0, %v3703_v6 }
 0x31f   : > { %3028 = vmatprep.subr.bf16.mxu0 %v3703_v6 }
 0x321   : > { %v1810_v29 = vpop.permute.xlu1 %1809 }
 0x325   : > { %3019 = vmatmul.mubr.msk.bf16.vlgmr.msra.gmra.mrb[16].mxu0 %vm1136_vm2, %v1466_v21  ;;  %v1920_v31 = vpop.permute.xlu1 %1919 }
 0x326   : > { %3029 = vmatpush3.bf16.xpose.msra.mxu0 %v1598_v22  ;;  %3030 = vmatprep.mubr.msk.bf16.mxu0 %vm3705_vm0, %v3703_v6 }
 0x327   : > { %3040 = vmatprep.subr.bf16.mxu0 %v3703_v6 }
 0x32d   : > { %3031 = vmatmul.mubr.msk.bf16.vlgmr.msra.gmra.mrb[20].mxu0 %vm1136_vm2, %v1592_v12 }
 0x32e   : > { %3041 = vmatpush3.bf16.xpose.msra.mxu0 %v1707_v24  ;;  %3042 = vmatprep.mubr.msk.bf16.mxu0 %vm3705_vm0, %v3703_v6 }
 0x32f   : > { %3052 = vmatprep.subr.bf16.mxu0 %v3703_v6 }
 0x335   : > { %3043 = vmatmul.mubr.msk.bf16.vlgmr.msra.gmra.mrb[24].mxu0 %vm1136_vm2, %v1700_v26 }
 0x336   : > { %3053 = vmatpush3.bf16.xpose.msra.mxu0 %v1817_v27  ;;  %3054 = vmatprep.mubr.msk.bf16.mxu0 %vm3705_vm0, %v3703_v6 }
 0x337   : > { %3064 = vmatprep.subr.bf16.mxu0 %v3703_v6 }
 0x33d   : > { %3055 = vmatmul.mubr.msk.bf16.vlgmr.msra.gmra.mrb[28].mxu0 %vm1136_vm2, %v1810_v29 }
 0x33e   : > { %3065 = vmatpush3.bf16.xpose.msra.mxu0 %v1927_v30  ;;  %3066 = vmatprep.mubr.msk.bf16.mxu0 %vm3705_vm0, %v3703_v6 }
 0x33f   : > { %3076 = vmatprep.subr.bf16.mxu0 %v3703_v6 }
 0x345   : > { %3067 = vmatmul.mubr.msk.bf16.vlgmr.msra.gmra.mrb[32].mxu0 %vm1136_vm2, %v1920_v31 }
 0x346   : > { %3080 = vmatprep.mubr.msk.bf16.mxu0 %vm3705_vm0, %v3703_v6 }
 0x375   : > { %v1177_v33 = vpop.f32.mrb[4].mxu0 }
 0x376   : > { %v1178_v34 = vadd.f32 %v1177_v33, %v1135_v32  ;;  %v2984_v35 = vpop.f32.mrb[5].mxu0 }
 0x377   : > { %v1180_v36 = vpop.f32.mrb[6].mxu0 }
 0x378   : > { %v2985_v37 = vpop.f32.mrb[7].mxu0  ;;  %v1183_v38 = vsel %vm1136_vm2, %v1178_v34, -inf }
 0x379   : > { %1184 = vmax.xlane.f32.xlu0 %v1183_v38 }
 0x3e8   : > { %v1288_v39 = vpop.f32.mrb[8].mxu0 }
 0x3e9   : > { %v1289_v40 = vadd.f32 %v1288_v39, %v1135_v32  ;;  %v2996_v41 = vpop.f32.mrb[9].mxu0 }
 0x3ea   : > { %v1291_v42 = vpop.f32.mrb[10].mxu0 }
 0x3eb   : > { %v2997_v43 = vpop.f32.mrb[11].mxu0  ;;  %v1294_v44 = vsel %vm1136_vm2, %v1289_v40, -inf }
 0x3ec   : > { %1295 = vmax.xlane.f32.xlu1 %v1294_v44 }
 0x3f0   : > { %v1399_v45 = vpop.f32.mrb[12].mxu0 }
 0x3f1   : > { %v1400_v46 = vadd.f32 %v1399_v45, %v1135_v32  ;;  %v3008_v47 = vpop.f32.mrb[13].mxu0 }
 0x3f2   : > { %v1402_v48 = vpop.f32.mrb[14].mxu0  ;;  %v4308_v47 = vrot.slane %v4215_v3, 4 }
 0x3f3   : > { %v3009_v49 = vpop.f32.mrb[15].mxu0  ;;  %v1405_v50 = vsel %vm1136_vm2, %v1400_v46, -inf }
 0x3f4   : > { %1406 = vmax.xlane.f32.xlu0 %v1405_v50 }
 0x3f8   : > { %v1509_v51 = vpop.f32.mrb[16].mxu0 }
 0x3f9   : > { %v1510_v52 = vadd.f32 %v1509_v51, %v1135_v32  ;;  %v3020_v53 = vpop.f32.mrb[17].mxu0 }
 0x3fa   : > { %v1512_v54 = vpop.f32.mrb[18].mxu0 }
 0x3fb   : > { %v3021_v55 = vpop.f32.mrb[19].mxu0  ;;  %v1515_v56 = vsel %vm1136_vm2, %v1510_v52, -inf }
 0x3fc   : > { %1516 = vmax.xlane.f32.xlu0 %v1515_v56 }
 0x400   : > { %v1634_v57 = vpop.f32.mrb[20].mxu0 }
 0x401   : > { %v1635_v58 = vadd.f32 %v1634_v57, %v1135_v32  ;;  %v3032_v59 = vpop.f32.mrb[21].mxu0 }
 0x402   : > { %v1637_v60 = vpop.f32.mrb[22].mxu0 }
 0x403   : > { %v3033_v61 = vpop.f32.mrb[23].mxu0  ;;  %v1640_v62 = vsel %vm1136_vm2, %v1635_v58, -inf }
 0x404   : > { %1641 = vmax.xlane.f32.xlu0 %v1640_v62 }
 0x406   : > { %v1185_v63 = vpop.xlane.xlu0 %1184 }
 0x407   : > { %v1186_v0 = vsub.f32 %v1178_v34, %v1185_v63 }
 0x408   : > { %v1743_v1 = vpop.f32.mrb[24].mxu0 }
 0x409   : > { %v1187_v2 = vmul.f32 1.442695, %v1186_v0  ;;  %v4277_v4 = vadd.f32 %v1743_v1, %v1135_v32  ;;  %v3044_v5 = vpop.f32.mrb[25].mxu0 }
 0x40a   : > { %v1746_v7 = vpop.f32.mrb[26].mxu0 }
 0x40b   : > { %3342 = vpow2.f32 %v1187_v2  ;;  %v3045_v8 = vpop.f32.mrb[27].mxu0  ;;  %v1749_v9 = vsel %vm1136_vm2, %v4277_v4, -inf }
 0x40c   : > { %1750 = vmax.xlane.f32.xlu1 %v1749_v9 }
 0x410   : > { %v1853_v10 = vpop.f32.mrb[28].mxu0 }
 0x411   : > { %v4281_v11 = vadd.f32 %v1853_v10, %v1135_v32  ;;  %v3056_v12 = vpop.f32.mrb[29].mxu0 }
 0x412   : > { %v1856_v13 = vpop.f32.mrb[30].mxu0 }
 0x413   : > { %v3057_v14 = vpop.f32.mrb[31].mxu0  ;;  %v1859_v15 = vsel %vm1136_vm2, %v4281_v11, -inf }
 0x414   : > { %1860 = vmax.xlane.f32.xlu0 %v1859_v15 }
 0x415   : > { %v3343_v16 = vpop.eup %3342 }
 0x416   : > { %v1189_v17 = vsel %vm1136_vm2, %v3343_v16, 0.0 }
 0x418   : > { %1190 = vadd.xlane.f32.xlu0 %v1189_v17  ;;  %v1963_v18 = vpop.f32.mrb[32].mxu0 }
 0x419   : > { %v1964_v19 = vadd.f32 %v1963_v18, %v1135_v32  ;;  %v3068_v20 = vpop.f32.mrb[33].mxu0 }
 0x41a   : > { %v1966_v21 = vpop.f32.mrb[34].mxu0  ;;  %v1657_v20 = vsel %vm1198_vm1, %v4308_v47, 0 }
 0x41b   : > { %v3069_v22 = vpop.f32.mrb[35].mxu0  ;;  %v1969_v23 = vsel %vm1136_vm2, %v1964_v19, -inf }
 0x41c   : > { %1970 = vmax.xlane.f32.xlu1 %v1969_v23 }
 0x42d   : > { %1307 = vrot.lane.b32.xlu1 %v4215_v3, %s3706_s4 }
 0x42e   : > { %1417 = vrot.lane.b32.xlu0 %v4215_v3, %s3708_s6 }
 0x479   : > { %v1296_v24 = vpop.xlane.xlu1 %1295 }
 0x47a   : > { %v1297_v25 = vsub.f32 %v1289_v40, %v1296_v24 }
 0x47c   : > { %v1298_v26 = vmul.f32 1.442695, %v1297_v25 }
 0x47e   : > { %3344 = vpow2.f32 %v1298_v26 }
 0x481   : > { %v1407_v27 = vpop.xlane.xlu0 %1406 }
 0x482   : > { %v1408_v28 = vsub.f32 %v1400_v46, %v1407_v27 }
 0x484   : > { %v1409_v29 = vmul.f32 1.442695, %v1408_v28 }
 0x486   : > { %3346 = vpow2.f32 %v1409_v29 }
 0x488   : > { %v4291_v30 = vpop.eup %3344 }
 0x489   : > { %v1517_v31 = vpop.xlane.xlu0 %1516  ;;  %v1300_v32 = vsel %vm1136_vm2, %v4291_v30, 0.0 }
 0x48a   : > { %v1518_v33 = vsub.f32 %v1510_v52, %v1517_v31  ;;  %1301 = vadd.xlane.f32.xlu1 %v1300_v32 }
 0x48c   : > { %v1519_v34 = vmul.f32 1.442695, %v1518_v33 }
 0x48e   : > { %3348 = vpow2.f32 %v1519_v34 }
 0x490   : > { %v4295_v35 = vpop.eup %3346 }
 0x491   : > { %v1642_v36 = vpop.xlane.xlu0 %1641  ;;  %v1411_v37 = vsel %vm1136_vm2, %v4295_v35, 0.0 }
 0x492   : > { %v1643_v38 = vsub.f32 %v1635_v58, %v1642_v36  ;;  %1412 = vadd.xlane.f32.xlu0 %v1411_v37 }
 0x494   : > { %v1644_v39 = vmul.f32 1.442695, %v1643_v38 }
 0x496   : > { %3350 = vpow2.f32 %v1644_v39 }
 0x498   : > { %v4299_v40 = vpop.eup %3348 }
 0x499   : > { %v1521_v41 = vsel %vm1136_vm2, %v4299_v40, 0.0  ;;  %v1751_v46 = vpop.xlane.xlu1 %1750 }
 0x49a   : > { %1522 = vadd.xlane.f32.xlu1 %v1521_v41  ;;  %v1752_v56 = vsub.f32 %v4277_v4, %v1751_v46 }
 0x49c   : > { %v1753_v57 = vmul.f32 1.442695, %v1752_v56 }
 0x4a0   : > { %v4303_v42 = vpop.eup %3350 }
 0x4a1   : > { %v1861_v43 = vpop.xlane.xlu0 %1860  ;;  %v1646_v44 = vsel %vm1136_vm2, %v4303_v42, 0.0 }
 0x4a2   : > { %1647 = vadd.xlane.f32.xlu0 %v1646_v44  ;;  %v1862_v54 = vsub.f32 %v4281_v11, %v1861_v43 }
 0x4a4   : > { %v1863_v55 = vmul.f32 1.442695, %v1862_v54 }
 0x4a5   : > { %v1191_v45 = vpop.xlane.xlu0 %1190 }
 0x4a6   : > { %3352 = vrcp.f32 %v1191_v45 }
 0x4a7   : > { %3354 = vpow2.f32 %v1863_v55 }
 0x4a8   : > { %3356 = vpow2.f32 %v1753_v57 }
 0x4a9   : > { %v1971_v48 = vpop.xlane.xlu1 %1970  ;;  %v1418_v2 = vpop.permute.xlu0 %1417 }
 0x4aa   : > { %v1972_v58 = vsub.f32 %v1964_v19, %v1971_v48  ;;  %v1423_v9 = vsel %vm1198_vm1, %v1418_v2, 0 }
 0x4ab   : > { %1761 = vrot.lane.b32.xlu1 %v4308_v47, %s3706_s4 }
 0x4ac   : > { %v1973_v59 = vmul.f32 1.442695, %v1972_v58 }
 0x4ad   : > { %v1308_v51 = vpop.permute.xlu1 %1307 }
 0x4ae   : > { %v1313_v53 = vsel %vm1198_vm1, %v1308_v51, 0  ;;  %3358 = vpow2.f32 %v1973_v59 }
 0x4b0   : > { %v3353_v49 = vpop.eup %3352 }
 0x4b1   : > { %v1193_v50 = vmul.f32 %v3353_v49, %v3343_v16  ;;  %v4321_v60 = vpop.eup %3354 }
 0x4b2   : > { %v1865_v61 = vsel %vm1136_vm2, %v4321_v60, 0.0 }
 0x4b3   : > { %v1194_v52 = vpack.c.bf16 %v1193_v50, %v1193_v50 }
 0x4b5   : > { %2989 = vmatmul.mubr.msk.bf16.vlgmr.msra.gmra.mrb[4].mxu1 %vm1136_vm2, %v1194_v52 }
 0x4b6   : > { %2999 = vmatpush3.bf16.msra.mxu1 %v1313_v53  ;;  %3000 = vmatprep.mubr.msk.bf16.mxu1 %vm3705_vm0, %v3703_v6 }
 0x4b7   : > { %3010 = vmatprep.subr.bf16.mxu1 %v3703_v6 }
 0x4b8   : > { %1527 = vrot.lane.b32.xlu0 %v4215_v3, %s3707_s26  ;;  %v3357_v3 = vpop.eup %3356 }
 0x4b9   : > { %v1755_v62 = vsel %vm1136_vm2, %v3357_v3, 0.0  ;;  %v4326_v63 = vpop.eup %3358 }
 0x4ba   : > { %v1975_v0 = vsel %vm1136_vm2, %v4326_v63, 0.0 }
 0x4cf   : > { %1866 = vadd.xlane.f32.xlu1 %v1865_v61 }
 0x4d7   : > { %1756 = vadd.xlane.f32.xlu0 %v1755_v62  ;;  %v3320_v62 = vld [vmem:[%s4110_s30] sm:$0xff]  }
 0x4d8   : > { %3077 = vmatpush3.bf16.msra.mxu0 %v3320_v62 }
 0x4d9   : > { %3078 = vmatprep.subr.bf16.mxu0 %v3703_v6 }
 0x4db   : > { %1976 = vadd.xlane.f32.xlu0 %v1975_v0 }
 0x4e0   : > { %1981 = vrot.lane.b32.xlu1 %v4308_v47, %s3707_s26 }
 0x4f1   : > { %1871 = vrot.lane.b32.xlu0 %v4308_v47, %s3708_s6 }
 0x517   : > { %v1302_v1 = vpop.xlane.xlu1 %1301 }
 0x518   : > { %3360 = vrcp.f32 %v1302_v1 }
 0x51f   : > { %v1413_v4 = vpop.xlane.xlu0 %1412 }
 0x520   : > { %3362 = vrcp.f32 %v1413_v4 }
 0x522   : > { %v3361_v5 = vpop.eup %3360 }
 0x523   : > { %v1304_v7 = vmul.f32 %v3361_v5, %v4291_v30  ;;  %v3321_v5 = vld [vmem:[%s4110_s30 + $0x8] sm:$0xff]  }
 0x524   : > { %3079 = vmatpush3.bf16.msra.mxu0 %v3321_v5 }
 0x525   : > { %v1305_v8 = vpack.c.bf16 %v1304_v7, %v1304_v7  ;;  %3104 = vmatprep.subr.bf16.mxu0 %v3703_v6 }
 0x527   : > { %3001 = vmatmul.mubr.msk.bf16.vlgmr.msra.gmra.mrb[8].mxu1 %vm1136_vm2, %v1305_v8  ;;  %v1523_v10 = vpop.xlane.xlu1 %1522 }
 0x528   : > { %3011 = vmatpush3.bf16.msra.mxu1 %v1423_v9  ;;  %3364 = vrcp.f32 %v1523_v10  ;;  %3012 = vmatprep.mubr.msk.bf16.mxu1 %vm3705_vm0, %v3703_v6 }
 0x529   : > { %3022 = vmatprep.subr.bf16.mxu1 %v3703_v6 }
 0x52a   : > { %v3363_v11 = vpop.eup %3362 }
 0x52b   : > { %v1415_v12 = vmul.f32 %v3363_v11, %v4295_v35  ;;  %v1762_v23 = vpop.permute.xlu1 %1761 }
 0x52c   : > { %v1767_v25 = vsel %vm1198_vm1, %v1762_v23, 0 }
 0x52d   : > { %v1416_v13 = vpack.c.bf16 %v1415_v12, %v1415_v12 }
 0x52f   : > { %v1648_v14 = vpop.xlane.xlu0 %1647  ;;  %3013 = vmatmul.mubr.msk.bf16.vlgmr.msra.gmra.mrb[12].mxu1 %vm1136_vm2, %v1416_v13 }
 0x530   : > { %3366 = vrcp.f32 %v1648_v14  ;;  %3024 = vmatprep.mubr.msk.bf16.mxu1 %vm3705_vm0, %v3703_v6 }
 0x532   : > { %v3365_v15 = vpop.eup %3364 }
 0x533   : > { %v1525_v16 = vmul.f32 %v3365_v15, %v4299_v40  ;;  %v1528_v17 = vpop.permute.xlu0 %1527 }
 0x534   : > { %v1533_v18 = vsel %vm1198_vm1, %v1528_v17, 0 }
 0x535   : > { %3023 = vmatpush3.bf16.msra.mxu1 %v1533_v18  ;;  %v1526_v19 = vpack.c.bf16 %v1525_v16, %v1525_v16 }
 0x536   : > { %3034 = vmatprep.subr.bf16.mxu1 %v3703_v6 }
 0x538   : > { %3025 = vmatmul.mubr.msk.bf16.vlgmr.msra.gmra.mrb[16].mxu1 %vm1136_vm2, %v1526_v19 }
 0x539   : > { %3035 = vmatpush3.bf16.msra.mxu1 %v1657_v20  ;;  %3036 = vmatprep.mubr.msk.bf16.mxu1 %vm3705_vm0, %v3703_v6 }
 0x53a   : > { %v3367_v21 = vpop.eup %3366  ;;  %3046 = vmatprep.subr.bf16.mxu1 %v3703_v6 }
 0x53b   : > { %v1650_v22 = vmul.f32 %v3367_v21, %v4303_v42 }
 0x53d   : > { %v1651_v24 = vpack.c.bf16 %v1650_v22, %v1650_v22 }
 0x540   : > { %3037 = vmatmul.mubr.msk.bf16.vlgmr.msra.gmra.mrb[20].mxu1 %vm1136_vm2, %v1651_v24 }
 0x541   : > { %3047 = vmatpush3.bf16.msra.mxu1 %v1767_v25  ;;  %3048 = vmatprep.mubr.msk.bf16.mxu1 %vm3705_vm0, %v3703_v6 }
 0x542   : > { %3058 = vmatprep.subr.bf16.mxu1 %v3703_v6 }
 0x55c   : > { %v1867_v27 = vpop.xlane.xlu1 %1866 }
 0x560   : > { %v1982_v36 = vpop.permute.xlu1 %1981 }
 0x561   : > { %v1987_v39 = vsel %vm1198_vm1, %v1982_v36, 0 }
 0x564   : > { %v1757_v26 = vpop.xlane.xlu0 %1756 }
 0x565   : > { %3368 = vrcp.f32 %v1757_v26 }
 0x566   : > { %3370 = vrcp.f32 %v1867_v27 }
 0x568   : > { %v1977_v28 = vpop.xlane.xlu0 %1976 }
 0x569   : > { %3372 = vrcp.f32 %v1977_v28 }
 0x56c   : > { %v1872_v31 = vpop.permute.xlu0 %1871 }
 0x56d   : > { %v1877_v34 = vsel %vm1198_vm1, %v1872_v31, 0 }
 0x56f   : > { %v3369_v29 = vpop.eup %3368 }
 0x570   : > { %v1759_v30 = vmul.f32 %v3369_v29, %v3357_v3  ;;  %v3371_v33 = vpop.eup %3370 }
 0x571   : > { %v1869_v35 = vmul.f32 %v3371_v33, %v4321_v60 }
 0x572   : > { %v1760_v32 = vpack.c.bf16 %v1759_v30, %v1759_v30 }
 0x573   : > { %v1870_v37 = vpack.c.bf16 %v1869_v35, %v1869_v35  ;;  %v3373_v38 = vpop.eup %3372 }
 0x574   : > { %3049 = vmatmul.mubr.msk.bf16.vlgmr.msra.gmra.mrb[24].mxu1 %vm1136_vm2, %v1760_v32  ;;  %v1979_v40 = vmul.f32 %v3373_v38, %v4326_v63  ;;  %v2846_v32 = vld [vmem:[%s816_s5] ss:$0 sm:$0xff] }
 0x575   : > { %3059 = vmatpush3.bf16.msra.mxu1 %v1877_v34  ;;  %3060 = vmatprep.mubr.msk.bf16.mxu1 %vm3705_vm0, %v3703_v6 }
 0x576   : > { %3070 = vmatprep.subr.bf16.mxu1 %v3703_v6  ;;  %v1980_v41 = vpack.c.bf16 %v1979_v40, %v1979_v40 }
 0x57c   : > { %3061 = vmatmul.mubr.msk.bf16.vlgmr.msra.gmra.mrb[28].mxu1 %vm1136_vm2, %v1870_v37  ;;  %v3378_v37 = vld [vmem:[#allocation2] sm:$0xff] }
 0x57d   : > { %3071 = vmatpush3.bf16.msra.mxu1 %v1987_v39  ;;  %3072 = vmatprep.mubr.msk.bf16.mxu1 %vm3705_vm0, %v3703_v6 }
 0x57e   : > { %3084 = vmatprep.subr.bf16.mxu1 %v3703_v6 }
 0x584   : > { %3073 = vmatmul.mubr.msk.bf16.vlgmr.msra.gmra.mrb[32].mxu1 %vm1136_vm2, %v1980_v41  ;;  %v3379_v41 = vld [vmem:[#allocation2 + $0x8] sm:$0xff] }
 0x585   : > { %3100 = vmatprep.mubr.msk.bf16.mxu1 %vm3705_vm0, %v3703_v6 }
 0x588   : > { %v1236_v42 = vpop.f32.mrb[4].mxu1 }
 0x589   : > { %v2990_v43 = vpop.f32.mrb[5].mxu1 }
 0x58a   : > { %v1239_v44 = vpop.f32.mrb[6].mxu1 }
 0x58b   : > { %v2991_v45 = vpop.f32.mrb[7].mxu1 }
 0x58c   : > { %v3322_v45 = vld [vmem:[%s4112_s17] sm:$0xff]  }
 0x58d   : > { %3085 = vmatpush3.bf16.msra.mxu1 %v3322_v45 }
 0x58e   : > { %3086 = vmatprep.subr.bf16.mxu1 %v3703_v6 }
 0x5fa   : > { %v1349_v46 = vpop.f32.mrb[8].mxu1 }
 0x5fb   : > { %v3002_v47 = vpop.f32.mrb[9].mxu1 }
 0x5fc   : > { %v1352_v48 = vpop.f32.mrb[10].mxu1  ;;  %v3324_v47 = vld [vmem:[%s4112_s17 + $0x10] sm:$0xff]  }
 0x5fd   : > { %v3003_v49 = vpop.f32.mrb[11].mxu1  ;;  %v3325_v48 = vld [vmem:[%s4112_s17 + $0x18] sm:$0xff]  }
 0x5fe   : > { %v3326_v49 = vld [vmem:[%s4112_s17 + $0x20] sm:$0xff]  }
 0x602   : > { %v1459_v50 = vpop.f32.mrb[12].mxu1 }
 0x603   : > { %v3014_v51 = vpop.f32.mrb[13].mxu1 }
 0x604   : > { %v1462_v52 = vpop.f32.mrb[14].mxu1  ;;  %v3328_v51 = vld [vmem:[%s4112_s17 + $0x30] sm:$0xff]  }
 0x605   : > { %v3015_v53 = vpop.f32.mrb[15].mxu1  ;;  %v3329_v52 = vld [vmem:[%s4112_s17 + $0x38] sm:$0xff]  }
 0x606   : > { %v3330_v53 = vld [vmem:[%s4114_s24] sm:$0xff]  }
 0x60b   : > { %v1569_v54 = vpop.f32.mrb[16].mxu1 }
 0x60c   : > { %v3026_v55 = vpop.f32.mrb[17].mxu1 }
 0x60d   : > { %v1572_v56 = vpop.f32.mrb[18].mxu1  ;;  %v3332_v55 = vld [vmem:[%s4114_s24 + $0x10] sm:$0xff]  }
 0x60e   : > { %v3027_v57 = vpop.f32.mrb[19].mxu1  ;;  %v3333_v56 = vld [vmem:[%s4114_s24 + $0x18] sm:$0xff]  }
 0x60f   : > { %v3334_v57 = vld [vmem:[%s4114_s24 + $0x20] sm:$0xff]  }
 0x613   : > { %v1693_v58 = vpop.f32.mrb[20].mxu1 }
 0x614   : > { %v3038_v59 = vpop.f32.mrb[21].mxu1 }
 0x615   : > { %v1696_v60 = vpop.f32.mrb[22].mxu1 }
 0x616   : > { %v3039_v61 = vpop.f32.mrb[23].mxu1 }
 0x647   : > { %v1803_v3 = vpop.f32.mrb[24].mxu1 }
 0x648   : > { %v3273_v63 = vpack.i.bf16 %v1803_v3, %v1349_v46  ;;  %v3050_v0 = vpop.f32.mrb[25].mxu1  ;;  %v3323_v46 = vld [vmem:[%s4112_s17 + $0x8] sm:$0xff]  }
 0x649   : > { %v1806_v1 = vpop.f32.mrb[26].mxu1  ;;  %3087 = vmatpush3.bf16.msra.mxu1 %v3323_v46 }
 0x64a   : > { %3274 = vrot.lane.b32.xlu1 %v3273_v63, %s3709_s7  ;;  %v3051_v2 = vpop.f32.mrb[27].mxu1  ;;  %3088 = vmatprep.subr.bf16.mxu1 %v3703_v6 }
 0x64d   : > { %3089 = vmatpush3.bf16.msra.mxu1 %v3324_v47 }
 0x64e   : > { %3090 = vmatprep.subr.bf16.mxu1 %v3703_v6 }
 0x64f   : > { %v1913_v4 = vpop.f32.mrb[28].mxu1 }
 0x650   : > { %v3278_v7 = vpack.i.bf16 %v1913_v4, %v1459_v50  ;;  %v3062_v8 = vpop.f32.mrb[29].mxu1  ;;  %v3327_v50 = vld [vmem:[%s4112_s17 + $0x28] sm:$0xff]  }
 0x651   : > { %v1916_v9 = vpop.f32.mrb[30].mxu1  ;;  %3091 = vmatpush3.bf16.msra.mxu1 %v3325_v48 }
 0x652   : > { %3279 = vrot.lane.b32.xlu1 %v3278_v7, %s3710_s12  ;;  %v3063_v10 = vpop.f32.mrb[31].mxu1  ;;  %3092 = vmatprep.subr.bf16.mxu1 %v3703_v6 }
 0x655   : > { %3093 = vmatpush3.bf16.msra.mxu1 %v3326_v49 }
 0x656   : > { %3094 = vmatprep.subr.bf16.mxu1 %v3703_v6 }
 0x657   : > { %v2023_v11 = vpop.f32.mrb[32].mxu1 }
 0x658   : > { %v3283_v12 = vpack.i.bf16 %v2023_v11, %v1569_v54  ;;  %v3074_v13 = vpop.f32.mrb[33].mxu1  ;;  %v3331_v54 = vld [vmem:[%s4114_s24 + $0x8] sm:$0xff]  }
 0x659   : > { %v2026_v14 = vpop.f32.mrb[34].mxu1  ;;  %3095 = vmatpush3.bf16.msra.mxu1 %v3327_v50  ;;  %v2850_v13 = vld [vmem:[%s819_s16] ss:$0 sm:$0xff] }
 0x65a   : > { %3284 = vrot.lane.b32.xlu1 %v3283_v12, %s3711_s22  ;;  %v3075_v15 = vpop.f32.mrb[35].mxu1  ;;  %3096 = vmatprep.subr.bf16.mxu1 %v3703_v6 }
 0x65d   : > { %3097 = vmatpush3.bf16.msra.mxu1 %v3328_v51 }
 0x65e   : > { %3098 = vmatprep.subr.bf16.mxu1 %v3703_v6 }
 0x661   : > { %3099 = vmatpush3.bf16.msra.mxu1 %v3329_v52 }
 0x6bc   : > { %v3275_v16 = vpop.permute.xlu1 %3274 }
 0x6bd   : > { %v3277_v18 = vunpack.i.h.bf16 %v3275_v16  ;;  %v3276_v19 = vunpack.i.l.bf16 %v3275_v16 }
 0x6bf   : > { %v2041_v23 = vsel %vm1136_vm2, %v1693_v58, %v3277_v18  ;;  %v1587_v24 = vsel %vm1136_vm2, %v1236_v42, %v3276_v19  ;;  %v3335_v58 = vld [vmem:[%s4114_s24 + $0x28] sm:$0xff]   ;;  %v2851_v18 = vld [vmem:[%s822_s8] ss:$0 sm:$0xff] }
 0x6c4   : > { %v3280_v17 = vpop.permute.xlu1 %3279 }
 0x6c5   : > { %v3282_v20 = vunpack.i.h.bf16 %v3280_v17  ;;  %v3281_v21 = vunpack.i.l.bf16 %v3280_v17 }
 0x6c7   : > { %v1589_v27 = vsel %vm1588_vm3, %v1587_v24, %v3281_v21  ;;  %v2042_v28 = vsel %vm1588_vm3, %v2041_v23, %v3282_v20  ;;  %v3336_v23 = vld [vmem:[%s4114_s24 + $0x30] sm:$0xff]   ;;  %v3337_v24 = vld [vmem:[%s4114_s24 + $0x38] sm:$0xff]   ;;  %s4607_s24 = sld [smem:[#allocation20_spill]] }
 0x6cc   : > { %v3285_v22 = vpop.permute.xlu1 %3284 }
 0x6cd   : > { %v3287_v25 = vunpack.i.h.bf16 %v3285_v22  ;;  %v3286_v26 = vunpack.i.l.bf16 %v3285_v22  ;;  %p2870_p10 = scmp.ne.s32.totalorder %s4607_s24, 1 }
 0x6ce   : > { %v3380_v47 = vld [vmem:[#allocation12] sm:$0xff] (!%p2870_p10)   ;;  %v3712_v48 = vmov (!%p2870_p10), 0.0   ;;  %v3382_v49 = vld [vmem:[#allocation12 + $0x10] sm:$0xff] (!%p2870_p10)   ;;  %vm3713_vm6 = vmmov (!%p2870_p10), 0   ;;  %v3385_v51 = vld [vmem:[#allocation12 + $0x28] sm:$0xff] (!%p2870_p10)   ;;  %s4609_s20 = sld [smem:[#allocation38_spill]] (!%p2870_p10) }
 0x6cf   : > { %v1591_v29 = vsel %vm1590_vm4, %v1589_v27, %v3286_v26  ;;  %v2043_v30 = vsel %vm1590_vm4, %v2042_v28, %v3287_v25  ;;  %v2852_v25 = vld [vmem:[%s825_s9] ss:$0 sm:$0xff]  ;;  %v3384_v50 = vld [vmem:[#allocation12 + $0x20] sm:$0xff] (!%p2870_p10)   ;;  %v3386_v52 = vld [vmem:[#allocation12 + $0x30] sm:$0xff] (!%p2870_p10)   ;;  %s4610_s6 = sld [smem:[#allocation40_spill]] (!%p2870_p10) }
 0x6d0   : > { %v2044_v31 = vpack.c.bf16 %v2043_v30, %v1591_v29 }
 0x6d2   : > { %3081 = vmatmul.mubr.msk.bf16.vlgmr.msra.gmra.mrb[36].mxu0 %vm2068_vm5, %v2044_v31 }
 0x6d3   : > { %3120 = vmatprep.mubr.msk.bf16.mxu0 %vm3705_vm0, %v3703_v6  ;;  %3105 = vmatpush3.bf16.msra.mxu0 %v3330_v53  ;;  %v3387_v53 = vld [vmem:[#allocation12 + $0x38] sm:$0xff] (!%p2870_p10)  }
 0x6d4   : > { %3106 = vmatprep.subr.bf16.mxu0 %v3703_v6 }
 0x6d7   : > { %3107 = vmatpush3.bf16.msra.mxu0 %v3331_v54 }
 0x6d8   : > { %3108 = vmatprep.subr.bf16.mxu0 %v3703_v6 }
 0x6db   : > { %3109 = vmatpush3.bf16.msra.mxu0 %v3332_v55 }
 0x6dc   : > { %3110 = vmatprep.subr.bf16.mxu0 %v3703_v6 }
 0x6df   : > { %3111 = vmatpush3.bf16.msra.mxu0 %v3333_v56 }
 0x6e0   : > { %3112 = vmatprep.subr.bf16.mxu0 %v3703_v6 }
 0x6e3   : > { %3113 = vmatpush3.bf16.msra.mxu0 %v3334_v57 }
 0x6e4   : > { %3114 = vmatprep.subr.bf16.mxu0 %v3703_v6 }
 0x6e7   : > { %3115 = vmatpush3.bf16.msra.mxu0 %v3335_v58 }
 0x6e8   : > { %3116 = vmatprep.subr.bf16.mxu0 %v3703_v6 }
 0x6eb   : > { %3117 = vmatpush3.bf16.msra.mxu0 %v3336_v23 }
 0x6ec   : > { %3118 = vmatprep.subr.bf16.mxu0 %v3703_v6  ;;  %v2861_v6 = vld [vmem:[%s828_s29] ss:$0 sm:$0xff]  ;;  %s4608_s29 = sld [smem:[#allocation37_spill]] (!%p2870_p10) }
 0x6ef   : > { %3119 = vmatpush3.bf16.msra.mxu0 %v3337_v24 }
 0x6f0   : > { %3124 = vmatprep.subr.bf16.mxu0 (!%p2870_p10), %v3712_v48 }
 0x7a5   : > { %v2106_v33 = vpop.f32.mrb[36].mxu0 }
 0x7a6   : > { %v2107_v34 = vadd.f32 %v2846_v32, %v2106_v33  ;;  %v3082_v35 = vpop.f32.mrb[37].mxu0 }
 0x7a7   : > { %v2109_v36 = vpop.f32.mrb[38].mxu0 }
 0x7a8   : > { %v4388_v38 = vadd.f32 %v3378_v37, %v2107_v34  ;;  %v2110_v39 = vadd.f32 %v2846_v32, %v2109_v36  ;;  %v3083_v40 = vpop.f32.mrb[39].mxu0 }
 0x7aa   : > { %v4390_v42 = vadd.f32 %v3379_v41, %v2110_v39  ;;  %2117 = vadd.xlane.f32.xlu1 %v4388_v38  ;;  %v2123_v43 = vmul.f32 %v4388_v38, %v4388_v38 }
 0x7ac   : > { %2119 = vadd.xlane.f32.xlu0 %v4390_v42  ;;  %v2124_v44 = vmul.f32 %v4390_v42, %v4390_v42 }
 0x7b0   : > { %2125 = vadd.xlane.f32.xlu0 %v2123_v43 }
 0x7b4   : > { %2127 = vadd.xlane.f32.xlu0 %v2124_v44 }
 0x837   : > { %v2118_v59 = vpop.xlane.xlu1 %2117 }
 0x838   : > { %v2121_v61 = vmul.f32 0.03125, %v2118_v59 }
 0x839   : > { %v2120_v60 = vpop.xlane.xlu0 %2119 }
 0x83a   : > { %v2131_v62 = vmul.f32 %v2121_v61, %v2121_v61  ;;  %v2122_v63 = vmul.f32 0.03125, %v2120_v60  ;;  %v2135_v10 = vsub.f32 %v4388_v38, %v2121_v61 }
 0x83c   : > { %v2132_v4 = vmul.f32 %v2122_v63, %v2122_v63  ;;  %v2136_v14 = vsub.f32 %v4390_v42, %v2122_v63 }
 0x83d   : > { %v2126_v3 = vpop.xlane.xlu0 %2125 }
 0x83e   : > { %v2129_v0 = vmul.f32 0.03125, %v2126_v3 }
 0x840   : > { %v2133_v1 = vsub.f32 %v2129_v0, %v2131_v62 }
 0x841   : > { %v2128_v2 = vpop.xlane.xlu0 %2127 }
 0x842   : > { %v2137_v5 = vadd.f32 1e-05, %v2133_v1  ;;  %v2130_v7 = vmul.f32 0.03125, %v2128_v2 }
 0x844   : > { %3374 = vrsqrt.f32 %v2137_v5  ;;  %v2134_v8 = vsub.f32 %v2130_v7, %v2132_v4 }
 0x846   : > { %v2138_v9 = vadd.f32 1e-05, %v2134_v8  ;;  %v2871_v8 = vld [vmem:[%s4608_s29] ss:$0 sm:$0xff] (!%p2870_p10) }
 0x848   : > { %3376 = vrsqrt.f32 %v2138_v9 }
 0x84e   : > { %v3375_v11 = vpop.eup %3374 }
 0x84f   : > { %v2141_v12 = vmul.f32 %v3375_v11, %v2135_v10 }
 0x851   : > { %v2149_v17 = vmul.f32 %v2850_v13, %v2141_v12 }
 0x852   : > { %v3377_v15 = vpop.eup %3376 }
 0x853   : > { %v2142_v16 = vmul.f32 %v3377_v15, %v2136_v14  ;;  %v2157_v20 = vadd.f32 %v2851_v18, %v2149_v17 }
 0x855   : > { %v2150_v19 = vmul.f32 %v2850_v13, %v2142_v16  ;;  %v2872_v13 = vld [vmem:[%s4609_s20] ss:$0 sm:$0xff] (!%p2870_p10) }
 0x857   : > { %v2158_v21 = vadd.f32 %v2851_v18, %v2150_v19  ;;  %v2873_v18 = vld [vmem:[%s4610_s6] ss:$0 sm:$0xff] (!%p2870_p10) }
 0x859   : > { %v2159_v22 = vpack.c.bf16 %v2158_v21, %v2157_v20 }
 0x85b   : > { %3101 = vmatmul.mubr.bf16.vlgmr.msra.gmra.mrb[36].mxu1 %v2159_v22 }
 0x92e   : > { %v2265_v26 = vpop.f32.mrb[36].mxu1 }
 0x92f   : > { %v2266_v27 = vadd.f32 %v2852_v25, %v2265_v26  ;;  %v3102_v28 = vpop.f32.mrb[37].mxu1 }
 0x930   : > { %v2268_v29 = vpop.f32.mrb[38].mxu1 }
 0x931   : > { %v2269_v30 = vadd.f32 %v2852_v25, %v2268_v29  ;;  %v3103_v31 = vpop.f32.mrb[39].mxu1  ;;  %v2272_v32 = vmax.f32 %v2266_v27, 0.0 }
 0x933   : > { %v2273_v33 = vmax.f32 %v2269_v30, 0.0 }
 0x935   : > { %v2274_v34 = vpack.c.bf16 %v2273_v33, %v2272_v32 }
 0x937   : > { %3121 = vmatmul.mubr.bf16.vlgmr.msra.gmra.mrb[40].mxu0 %v2274_v34 }
 0x938   : > { %3125 = vmatpush3.bf16.msra.mxu0 (!%p2870_p10), %v3380_v47  ;;  %3140 = vmatprep.mubr.msk.bf16.mxu0 (!%p2870_p10), %vm3713_vm6, %v3712_v48 }
 0x939   : > { %3126 = vmatprep.subr.bf16.mxu0 (!%p2870_p10), %v3712_v48 }
 0xa0a   : > { %v2380_v35 = vpop.f32.mrb[40].mxu0 }
 0xa0b   : > { %v2381_v36 = vadd.f32 %v2861_v6, %v2380_v35  ;;  %v3122_v37 = vpop.f32.mrb[41].mxu0  ;;  %2394 = sbr.rel (%p2870_p10) target bundleno = 2965 (0xb95), region = 124 }
 0xa0c   : > { %v2383_v39 = vpop.f32.mrb[42].mxu0 }
 0xa0d   : > { %v2387_v40 = vadd.f32 %v2381_v36, %v4388_v38  ;;  %v2384_v41 = vadd.f32 %v2861_v6, %v2383_v39  ;;  %v3123_v43 = vpop.f32.mrb[43].mxu0  ;;  %v3381_v38 = vld [vmem:[#allocation12 + $0x8] sm:$0xff] (!%p2870_p10)  }
 0xa0e   : > { %3127 = vmatpush3.bf16.msra.mxu0 (!%p2870_p10), %v3381_v38 }
 0xa0f   : > { %2389 = vst [vmem:[#allocation2] sm:$0xff] %v2387_v40  ;;  %v2388_v44 = vadd.f32 %v2384_v41, %v4390_v42  ;;  %2397 = vadd.xlane.f32.xlu0 (!%p2870_p10), %v2387_v40  ;;  %v2403_v45 = vmul.f32 (!%p2870_p10), %v2387_v40, %v2387_v40  ;;  %3128 = vmatprep.subr.bf16.mxu0 (!%p2870_p10), %v3712_v48  ;;  %v3383_v42 = vld [vmem:[#allocation12 + $0x18] sm:$0xff] (!%p2870_p10)  }
 0xa11   : > { %2390 = vst [vmem:[#allocation2 + $0x8] sm:$0xff] %v2388_v44  ;;  %2405 = vadd.xlane.f32.xlu1 (!%p2870_p10), %v2403_v45  ;;  %v2404_v46 = vmul.f32 (!%p2870_p10), %v2388_v44, %v2388_v44 }
 0xa12   : > { %3129 = vmatpush3.bf16.msra.mxu0 %v3382_v49 }
 0xa13   : > { %2399 = vadd.xlane.f32.xlu0 %v2388_v44  ;;  %3130 = vmatprep.subr.bf16.mxu0 %v3712_v48 }
 0xa15   : > { %2407 = vadd.xlane.f32.xlu1 %v2404_v46 }
 0xa16   : > { %3131 = vmatpush3.bf16.msra.mxu0 %v3383_v42 }
 0xa17   : > { %3132 = vmatprep.subr.bf16.mxu0 %v3712_v48 }
 0xa1a   : > { %3133 = vmatpush3.bf16.msra.mxu0 %v3384_v50 }
 0xa1b   : > { %3134 = vmatprep.subr.bf16.mxu0 %v3712_v48 }
 0xa1e   : > { %3135 = vmatpush3.bf16.msra.mxu0 %v3385_v51 }
 0xa1f   : > { %3136 = vmatprep.subr.bf16.mxu0 %v3712_v48 }
 0xa22   : > { %3137 = vmatpush3.bf16.msra.mxu0 %v3386_v52 }
 0xa23   : > { %3138 = vmatprep.subr.bf16.mxu0 %v3712_v48 }
 0xa26   : > { %3139 = vmatpush3.bf16.msra.mxu0 %v3387_v53 }
 0xa9c   : > { %v2398_v54 = vpop.xlane.xlu0 %2397 }
 0xa9d   : > { %v2401_v55 = vmul.f32 0.03125, %v2398_v54 }
 0xa9e   : > { %v2406_v56 = vpop.xlane.xlu1 %2405 }
 0xa9f   : > { %v2411_v57 = vmul.f32 %v2401_v55, %v2401_v55  ;;  %v2409_v58 = vmul.f32 0.03125, %v2406_v56  ;;  %v2415_v4 = vsub.f32 %v2387_v40, %v2401_v55 }
 0xaa0   : > { %v2400_v59 = vpop.xlane.xlu0 %2399 }
 0xaa1   : > { %v2413_v60 = vsub.f32 %v2409_v58, %v2411_v57  ;;  %v2402_v61 = vmul.f32 0.03125, %v2400_v59 }
 0xaa2   : > { %v2408_v3 = vpop.xlane.xlu1 %2407 }
 0xaa3   : > { %v2417_v62 = vadd.f32 1e-05, %v2413_v60  ;;  %v2412_v63 = vmul.f32 %v2402_v61, %v2402_v61  ;;  %v2410_v0 = vmul.f32 0.03125, %v2408_v3  ;;  %v2416_v9 = vsub.f32 %v2388_v44, %v2402_v61 }
 0xaa5   : > { %3388 = vrsqrt.f32 %v2417_v62  ;;  %v2414_v1 = vsub.f32 %v2410_v0, %v2412_v63 }
 0xaa7   : > { %v2418_v2 = vadd.f32 1e-05, %v2414_v1 }
 0xaa9   : > { %3390 = vrsqrt.f32 %v2418_v2 }
 0xaaf   : > { %v3389_v5 = vpop.eup %3388 }
 0xab0   : > { %v2421_v7 = vmul.f32 %v3389_v5, %v2415_v4 }
 0xab2   : > { %v2429_v12 = vmul.f32 %v2871_v8, %v2421_v7 }
 0xab3   : > { %v3391_v10 = vpop.eup %3390 }
 0xab4   : > { %v2422_v11 = vmul.f32 %v3391_v10, %v2416_v9  ;;  %v2437_v15 = vadd.f32 %v2872_v13, %v2429_v12 }
 0xab6   : > { %v2430_v14 = vmul.f32 %v2871_v8, %v2422_v11 }
 0xab8   : > { %v2438_v16 = vadd.f32 %v2872_v13, %v2430_v14 }
 0xaba   : > { %v2439_v17 = vpack.c.bf16 %v2438_v16, %v2437_v15 }
 0xabc   : > { %3141 = vmatmul.mubr.bf16.vlgmr.msra.gmra.mrb[0].mxu0 %v2439_v17 }
 0xb8f   : > { %v2545_v19 = vpop.f32.mrb[0].mxu0 }
 0xb90   : > { %v2546_v20 = vadd.f32 %v2873_v18, %v2545_v19  ;;  %v3142_v21 = vpop.f32.mrb[1].mxu0 }
 0xb91   : > { %v2548_v22 = vpop.f32.mrb[2].mxu0 }
 0xb92   : > { %2552 = vst [vmem:[#allocation13] sm:$0xff] %v2546_v20  ;;  %v2549_v23 = vadd.f32 %v2873_v18, %v2548_v22  ;;  %v3143_v24 = vpop.f32.mrb[3].mxu0 }
 0xb94   : > { %2553 = vst [vmem:[#allocation13 + $0x8] sm:$0xff] %v2549_v23 }
 0xb95 PF: > { %p3201_p3 = scmp.eq.s32.totalorder %s3835_s0, 1  ;;  %s3714_s12 = smov [#allocation13]  }
 0xb96   : > { %s2563_s22 = sshll.u32 %s3714_s12, 4  ;;  %s2564_s22 = int_to_ptr.vmem [resolvable:$true] %s2563_s22 }
 0xb97   : > { %s3596_s30 = scalar_lea.vmem %s2564_s22, 256  ;;  %p3603_p11 = scmp.lt.s32.totalorder %s2564_s22, %s2564_s22 }
 0xb98   : > { %p3597_p5 = scmp.ne.s32.totalorder %s2564_s22, %s3596_s30  ;;  %p3604_p0 = scmp.lt.s32.totalorder %s3596_s30, %s3596_s30 }
 0xb9a   : > { %p3598_p4 = pnand %p3597_p5, %p3201_p3  ;;  %p3605_p7 = por %p3604_p0, %p3603_p11 }
 0xb9c   : > { %p3599_p12 = pneg %p3598_p4 }
 0xb9e   : > { %p3606_p9 = pnand %p3605_p7, %p3599_p12 }
 0xba0   : > { %3609 = shalt.err (!%p3606_p9)
}
 0xba1   : > { %s4611_s17 = sld [smem:[#allocation41_spill]] }
 0xba7   : > { %s3610_s5 = scalar_lea.hbm %s4611_s17, 256 }
 0xba8   : > { %p3611_p8 = scmp.ne.s32.totalorder %s4611_s17, %s3610_s5  ;;  %p3616_p1 = scmp.lt.u32.totalorder %s3610_s5, %s4611_s17 }
 0xbaa   : > { %p3612_p13 = pnand %p3611_p8, %p3201_p3 }
 0xbac   : > { %p3613_p6 = pneg %p3612_p13 }
 0xbae   : > { %p3618_p2 = pnand %p3616_p1, %p3613_p6 }
 0xbb0   : > { %3621 = shalt.err (!%p3618_p2)
}
 0xbb1   : > { %s3715_s16 = smov 128  }
 0xbb2   : > { %3168 = dma.vmem_to_hbm [thread:$0]  (%p3201_p3), %s2564_s22, 256, %s4611_s17, [#allocation5], %s3715_s16, %s3715_s16, %s3709_s7  }
 0xbb3   : > { %3663 = dma.done.wait (%p3201_p3), [#allocation5], 256  }
 0xbb4   : > { %3665 = vsyncadd (%p3201_p3), [#allocation5], 4294967040 }
 0xbb5 PF: > { %s4612_s8 = sld [smem:[#allocation21_spill]]  ;;  %s4613_s23 = sld [smem:[#allocation19_spill]] }
 0xbb6   : > { %s4614_s26 = sld [smem:[#allocation23_spill]]  ;;  %s4615_s14 = sld [smem:[#allocation22_spill]] }
 0xbb7   : > { %s4616_s24 = smov %s3672_s25  ;;  %s4618_s27 = smov %s3684_s28 }
 0xbbb   : > { %s30_s29 = sadd.s32 1, %s4612_s8   ;;  %s4617_s25 = smov %s4613_s23 }
 0xbbc   : > { %p27_p10 = scmp.ge.s32.totalorder %s30_s29, 4   ;;  %s4619_s28 = smov %s4615_s14 }
 0xbbe   :  { %29 = sbr.rel (!%p27_p10) target bundleno = 24 (0x18), region = 200 }
 0xbc5   :  { %2579 = vsyncpa [#allocation4], 1 }
 0xbc6   :  { %2581 = vsyncpa [#allocation4 + $0x1], 1 }
 0xbc7   :  { %2582 = vsyncpa [#allocation7], 1 }
 0xbc8   :  { %2583 = vsyncpa [#allocation5], 1 }
 0xbc9   :  { %2585 = vsyncpa [#allocation5 + $0x1], 1 }

</bundles_post_ra>
